<compile_context>
chip_gen: v7x
topology: tpu7x:2x2x1
jax: 0.10.0
libtpu: 0.0.40
codegen_flags: <defaults>
</compile_context>

<pallas_src>
import math

import jax
import jax.numpy as jnp
from jax import lax
from jax.experimental import pallas as pl
from jax.experimental.pallas import tpu as pltpu

# ---------------- model dims ----------------
B = 2            # batch
S = 8            # pad_size / sequence length
H = 32           # hidden_size
NH = 4           # attention heads
DH = H // NH     # head dim
INTER = 4 * H    # FFN intermediate
LAYERS = 2
VOCAB = 100
NUM_CLASSES = 6  # len(key) in the reference config
LANES = 128      # classifier output padded to a full lane vector
LN_EPS = 1e-12
ATT_SCALE = 1.0 / math.sqrt(DH)

# rows of the per-layer packed small-param slab: (LAYERS, 8, 128)
ROW_BQKV, ROW_BO, ROW_LN1G, ROW_LN1B, ROW_B1, ROW_B2, ROW_LN2G, ROW_LN2B = range(8)
# rows of the constant packed small-param slab: (4, 128)
CROW_EMBG, CROW_EMBB, CROW_POOLB, CROW_FCB = range(4)


# ---------------- in-kernel helpers (f32 math) ----------------
def _layernorm(x, g, b):
    mu = jnp.mean(x, axis=-1, keepdims=True)
    xc = x - mu
    var = jnp.mean(xc * xc, axis=-1, keepdims=True)
    return xc * lax.rsqrt(var + LN_EPS) * g + b


def _gelu(x):
    # TODO(synk): HF BERT default is erf-based gelu; tanh approximation used here
    # (keeps the transcendental on the EUP slot).
    c = math.sqrt(2.0 / math.pi)
    return 0.5 * x * (1.0 + jnp.tanh(c * (x + 0.044715 * x * x * x)))


# ---------------- fused BERT kernel ----------------
def _bert_kernel(emb_ref, mask_ref, cpack_ref,
                 wqkv_ref, wo_ref, w1_ref, w2_ref, lpack_ref,
                 poolw_ref, fcw_ref,
                 out_ref, x_vmem):
    """One grid step = one encoder layer; full-batch activation resident in VMEM."""
    l = pl.program_id(0)
    lp = lpack_ref[...]            # (8, 128)  per-layer small params (f32)
    cp = cpack_ref[...]            # (4, 128)  constant small params (f32)

    # --- layer 0: fuse the embedding LayerNorm, (re)initialize the resident x ---
    @pl.when(l == 0)
    def _():
        g = cp[CROW_EMBG:CROW_EMBG + 1, :H]
        b = cp[CROW_EMBB:CROW_EMBB + 1, :H]
        x_vmem[...] = _layernorm(emb_ref[...], g, b)

    x = x_vmem[...].reshape(B * S, H)            # (BS, H) f32

    # --- fused QKV projection: one (H, 3H) bf16 matmul, f32 accumulation ---
    qkv = (jnp.dot(x.astype(jnp.bfloat16), wqkv_ref[...],
                   preferred_element_type=jnp.float32)
           + lp[ROW_BQKV:ROW_BQKV + 1, :3 * H])              # (BS, 3H)
    qkv = qkv.reshape(B, S, 3 * H)

    # --- attention, all (head, batch) pairs batched into one contraction ---
    # head-major batch order n = h*B + b  (matches the wrapper-tiled mask)
    q = jnp.concatenate([qkv[:, :, h * DH:(h + 1) * DH]
                         for h in range(NH)], axis=0)                     # (NH*B,S,DH)
    k = jnp.concatenate([qkv[:, :, H + h * DH:H + (h + 1) * DH]
                         for h in range(NH)], axis=0)
    v = jnp.concatenate([qkv[:, :, 2 * H + h * DH:2 * H + (h + 1) * DH]
                         for h in range(NH)], axis=0)

    s = jnp.einsum('nqd,nkd->nqk', q, k,
                   preferred_element_type=jnp.float32) * ATT_SCALE        # (NH*B,S,S)
    s = s + mask_ref[...]                          # additive mask on key axis
    m = jnp.max(s, axis=-1, keepdims=True)
    e = jnp.exp(s - m)
    p = e * pl.reciprocal(jnp.sum(e, axis=-1, keepdims=True), approx=True)
    ctx = jnp.einsum('nqk,nkd->nqd', p, v,
                     preferred_element_type=jnp.float32)                  # (NH*B,S,DH)

    # concat heads back -> (BS, H); single output-projection matmul
    ctx = jnp.concatenate([ctx[h * B:(h + 1) * B]
                           for h in range(NH)], axis=-1)                  # (B,S,H)
    ctx = ctx.reshape(B * S, H)
    attn = (jnp.dot(ctx.astype(jnp.bfloat16), wo_ref[...],
                    preferred_element_type=jnp.float32)
            + lp[ROW_BO:ROW_BO + 1, :H])

    # --- residual + LayerNorm (fused epilogue) ---
    x1 = _layernorm(x + attn,
                    lp[ROW_LN1G:ROW_LN1G + 1, :H], lp[ROW_LN1B:ROW_LN1B + 1, :H])

    # --- FFN (GELU) + residual + LayerNorm ---
    h1 = _gelu(jnp.dot(x1.astype(jnp.bfloat16), w1_ref[...],
                       preferred_element_type=jnp.float32)
               + lp[ROW_B1:ROW_B1 + 1, :INTER])                           # (BS,INTER)
    h2 = (jnp.dot(h1.astype(jnp.bfloat16), w2_ref[...],
                  preferred_element_type=jnp.float32)
          + lp[ROW_B2:ROW_B2 + 1, :H])                                    # (BS,H)
    x2 = _layernorm(x1 + h2,
                    lp[ROW_LN2G:ROW_LN2G + 1, :H], lp[ROW_LN2B:ROW_LN2B + 1, :H])
    x_vmem[...] = x2.reshape(B, S, H)              # carry to next layer in VMEM

    # --- pooler + classifier, once for all B rows, fused into the last step ---
    @pl.when(l == pl.num_programs(0) - 1)
    def _():
        cls = jnp.concatenate([x2[b * S:b * S + 1, :] for b in range(B)],
                              axis=0)                                     # (B, H)
        pooled = jnp.tanh(jnp.dot(cls.astype(jnp.bfloat16), poolw_ref[...],
                                  preferred_element_type=jnp.float32)
                          + cp[CROW_POOLB:CROW_POOLB + 1, :H])            # (B, H)
        logits = (jnp.dot(pooled.astype(jnp.bfloat16), fcw_ref[...],
                          preferred_element_type=jnp.float32)
                  + cp[CROW_FCB:CROW_FCB + 1, :])                         # (B, 128)
        out_ref[...] = logits.astype(out_ref.dtype)


# ---------------- BlockSpec helpers ----------------
def _const_spec(shape):
    rank = len(shape)
    return pl.BlockSpec(tuple(shape), lambda l, _r=rank: (0,) * _r)


def _layer_spec(shape):
    rank = len(shape)
    return pl.BlockSpec((None,) + tuple(shape[1:]),
                        lambda l, _r=rank: (l,) + (0,) * (_r - 1))


# ---------------- parameter init (deterministic, synthetic) ----------------
def init_params(key):
    def nrm(k, shape, scale=0.02, dtype=jnp.float32):
        return (scale * jax.random.normal(k, shape)).astype(dtype)

    ks = jax.random.split(key, 10)

    # per-layer small params packed into one slab (biases zero, LN gammas one)
    lpack = jnp.zeros((LAYERS, 8, LANES), jnp.float32)
    lpack = lpack.at[:, ROW_LN1G, :H].set(1.0)
    lpack = lpack.at[:, ROW_LN2G, :H].set(1.0)

    # constant small params packed into one slab
    cpack = jnp.zeros((4, LANES), jnp.float32)
    cpack = cpack.at[CROW_EMBG, :H].set(1.0)   # emb LN gamma=1; betas/biases zero

    # classifier weights pre-padded to 128 lanes (lane-dense stores in-kernel)
    fc_w = jnp.zeros((H, LANES), jnp.float32)
    fc_w = fc_w.at[:, :NUM_CLASSES].set(0.02 * jax.random.normal(ks[8], (H, NUM_CLASSES)))

    return {
        "word_emb": nrm(ks[0], (VOCAB, H)),
        "pos_emb": nrm(ks[1], (S, H)),
        "type_emb": nrm(ks[2], (2, H)),
        "cpack": cpack,
        "lpack": lpack,
        # big per-layer weights stacked on a leading LAYERS axis, bf16 (halves DMA)
        "wqkv": nrm(ks[3], (LAYERS, H, 3 * H), dtype=jnp.bfloat16),
        "wo": nrm(ks[4], (LAYERS, H, H), dtype=jnp.bfloat16),
        "w1": nrm(ks[5], (LAYERS, H, INTER), dtype=jnp.bfloat16),
        "w2": nrm(ks[6], (LAYERS, INTER, H), dtype=jnp.bfloat16),
        "pool_w": nrm(ks[7], (H, H), dtype=jnp.bfloat16),
        "fc_w": fc_w.astype(jnp.bfloat16),
    }


# ---------------- forward pass (Model.forward equivalent) ----------------
@jax.jit
def model_forward(params, context, mask):
    """context: (B,S) int32 token ids; mask: (B,S) float32 attention mask."""
    # embedding gather + sum stays in XLA glue (data-dependent gather);
    # token_type_ids assumed all zero (only type_emb[0] added).
    emb = (jnp.take(params["word_emb"], context, axis=0)
           + params["pos_emb"][None, :, :]
           + params["type_emb"][0][None, None, :]).astype(jnp.float32)   # (B,S,H)
    mask_bias = ((1.0 - mask) * -10000.0).reshape(B, 1, S).astype(jnp.float32)
    mask_nb = jnp.tile(mask_bias, (NH, 1, 1))    # (NH*B,1,S), head-major n = h*B + b

    ins = [
        emb, mask_nb, params["cpack"],
        params["wqkv"], params["wo"], params["w1"], params["w2"], params["lpack"],
        params["pool_w"], params["fc_w"],
    ]
    in_specs = [
        _const_spec(emb.shape), _const_spec(mask_nb.shape),
        _const_spec(params["cpack"].shape),
        _layer_spec(params["wqkv"].shape), _layer_spec(params["wo"].shape),
        _layer_spec(params["w1"].shape), _layer_spec(params["w2"].shape),
        _layer_spec(params["lpack"].shape),
        _const_spec(params["pool_w"].shape), _const_spec(params["fc_w"].shape),
    ]

    logits_pad = pl.pallas_call(
        _bert_kernel,
        out_shape=jax.ShapeDtypeStruct((B, LANES), jnp.float32),
        grid=(LAYERS,),
        in_specs=in_specs,
        out_specs=pl.BlockSpec((B, LANES), lambda l: (0, 0)),
        scratch_shapes=[pltpu.VMEM((B, S, H), jnp.float32)],
        compiler_params=pltpu.CompilerParams(
            dimension_semantics=("arbitrary",),
            vmem_limit_bytes=32 * 1024 * 1024),
    )(*ins)

    return logits_pad[:, :NUM_CLASSES]


if __name__ == "__main__":
    root = jax.random.PRNGKey(0)
    k_params, k_ids = jax.random.split(root, 2)

    params = init_params(k_params)

    # deterministic example inputs (x = (context, mask) as in Model.forward)
    context = jax.random.randint(k_ids, (B, S), 0, VOCAB, dtype=jnp.int32)
    mask = jnp.ones((B, S), jnp.float32)
    mask = mask.at[1, 6:].set(0.0)   # second example padded after position 6

    logits = model_forward(params, context, mask)
    logits = jax.block_until_ready(logits)

    assert logits.shape == (B, NUM_CLASSES)
    assert bool(jnp.all(jnp.isfinite(logits)))
    print("KERNEL_OK")
</pallas_src>

<mosaic_0001>
module attributes {stable_mosaic.version = 11 : i64} {
  func.func @_bert_kernel(%arg0: i32, %arg1: memref<2x8x32xf32, #tpu.memory_space<vmem>>, %arg2: memref<8x1x8xf32, #tpu.memory_space<vmem>>, %arg3: memref<4x128xf32, #tpu.memory_space<vmem>>, %arg4: memref<1x32x96xbf16, #tpu.memory_space<vmem>>, %arg5: memref<1x32x32xbf16, #tpu.memory_space<vmem>>, %arg6: memref<1x32x128xbf16, #tpu.memory_space<vmem>>, %arg7: memref<1x128x32xbf16, #tpu.memory_space<vmem>>, %arg8: memref<1x8x128xf32, #tpu.memory_space<vmem>>, %arg9: memref<32x32xbf16, #tpu.memory_space<vmem>>, %arg10: memref<32x128xbf16, #tpu.memory_space<vmem>>, %arg11: memref<2x128xf32, #tpu.memory_space<vmem>>, %arg12: memref<2x8x32xf32, #tpu.memory_space<vmem>>) attributes {dimension_semantics = [#tpu.dimension_semantics<arbitrary>], iteration_bounds = array<i64: 2>, scalar_prefetch = 0 : i64, scratch_operands = 1 : i64, tpu.core_type = #tpu.core_type<tc>, window_params = [{pipeline_mode = #tpu.pipeline_mode<synchronous>, transform_indices = @transform_0, window_bounds = array<i64: 2, 8, 32>}, {pipeline_mode = #tpu.pipeline_mode<synchronous>, transform_indices = @transform_1, window_bounds = array<i64: 8, 1, 8>}, {pipeline_mode = #tpu.pipeline_mode<synchronous>, transform_indices = @transform_2, window_bounds = array<i64: 4, 128>}, {transform_indices = @transform_3, window_bounds = array<i64: 1, 32, 96>}, {transform_indices = @transform_4, window_bounds = array<i64: 1, 32, 32>}, {transform_indices = @transform_5, window_bounds = array<i64: 1, 32, 128>}, {transform_indices = @transform_6, window_bounds = array<i64: 1, 128, 32>}, {transform_indices = @transform_7, window_bounds = array<i64: 1, 8, 128>}, {pipeline_mode = #tpu.pipeline_mode<synchronous>, transform_indices = @transform_8, window_bounds = array<i64: 32, 32>}, {pipeline_mode = #tpu.pipeline_mode<synchronous>, transform_indices = @transform_9, window_bounds = array<i64: 32, 128>}, {pipeline_mode = #tpu.pipeline_mode<synchronous>, transform_indices = @transform_10, window_bounds = array<i64: 2, 128>}]} {
    %c0 = arith.constant 0 : index
    %c0_0 = arith.constant 0 : index
    %c0_1 = arith.constant 0 : index
    %0 = vector.load %arg8[%c0, %c0_0, %c0_1] : memref<1x8x128xf32, #tpu.memory_space<vmem>>, vector<1x8x128xf32>
    %1 = vector.shape_cast %0 : vector<1x8x128xf32> to vector<8x128xf32>
    %c0_2 = arith.constant 0 : index
    %c0_3 = arith.constant 0 : index
    %2 = vector.load %arg3[%c0_2, %c0_3] : memref<4x128xf32, #tpu.memory_space<vmem>>, vector<4x128xf32>
    %c0_i32 = arith.constant 0 : i32
    %3 = arith.cmpi eq, %arg0, %c0_i32 : i32
    %4 = arith.extui %3 : i1 to i32
    %c0_i32_4 = arith.constant 0 : i32
    %5 = arith.cmpi ne, %4, %c0_i32_4 : i32
    scf.if %5 {
      %139 = vector.extract_strided_slice %2 {offsets = [0, 0], sizes = [1, 32], strides = [1, 1]} : vector<4x128xf32> to vector<1x32xf32>
      %140 = vector.extract_strided_slice %2 {offsets = [1, 0], sizes = [1, 32], strides = [1, 1]} : vector<4x128xf32> to vector<1x32xf32>
      %c0_49 = arith.constant 0 : index
      %c0_50 = arith.constant 0 : index
      %c0_51 = arith.constant 0 : index
      %141 = vector.load %arg1[%c0_49, %c0_50, %c0_51] : memref<2x8x32xf32, #tpu.memory_space<vmem>>, vector<2x8x32xf32>
      %cst_52 = arith.constant dense<0.000000e+00> : vector<2x8xf32>
      %142 = vector.multi_reduction <add>, %141, %cst_52 [2] : vector<2x8x32xf32> to vector<2x8xf32>
      %143 = vector.shape_cast %142 : vector<2x8xf32> to vector<2x8x1xf32>
      %cst_53 = arith.constant 3.200000e+01 : f32
      %144 = vector.broadcast %cst_53 : f32 to vector<2x8x1xf32>
      %145 = arith.divf %143, %144 : vector<2x8x1xf32>
      %146 = vector.broadcast %145 : vector<2x8x1xf32> to vector<2x8x32xf32>
      %147 = arith.subf %141, %146 : vector<2x8x32xf32>
      %148 = arith.mulf %147, %147 : vector<2x8x32xf32>
      %cst_54 = arith.constant dense<0.000000e+00> : vector<2x8xf32>
      %149 = vector.multi_reduction <add>, %148, %cst_54 [2] : vector<2x8x32xf32> to vector<2x8xf32>
      %150 = vector.shape_cast %149 : vector<2x8xf32> to vector<2x8x1xf32>
      %cst_55 = arith.constant 3.200000e+01 : f32
      %151 = vector.broadcast %cst_55 : f32 to vector<2x8x1xf32>
      %152 = arith.divf %150, %151 : vector<2x8x1xf32>
      %cst_56 = arith.constant 9.99999996E-13 : f32
      %153 = vector.broadcast %cst_56 : f32 to vector<2x8x1xf32>
      %154 = arith.addf %152, %153 : vector<2x8x1xf32>
      %155 = math.rsqrt %154 : vector<2x8x1xf32>
      %156 = vector.broadcast %155 : vector<2x8x1xf32> to vector<2x8x32xf32>
      %157 = arith.mulf %147, %156 : vector<2x8x32xf32>
      %158 = vector.shape_cast %139 : vector<1x32xf32> to vector<1x1x32xf32>
      %159 = vector.broadcast %158 : vector<1x1x32xf32> to vector<2x8x32xf32>
      %160 = arith.mulf %157, %159 : vector<2x8x32xf32>
      %161 = vector.shape_cast %140 : vector<1x32xf32> to vector<1x1x32xf32>
      %162 = vector.broadcast %161 : vector<1x1x32xf32> to vector<2x8x32xf32>
      %163 = arith.addf %160, %162 : vector<2x8x32xf32>
      %c0_57 = arith.constant 0 : index
      %c0_58 = arith.constant 0 : index
      %c0_59 = arith.constant 0 : index
      %164 = vector.load %arg12[%c0_57, %c0_58, %c0_59] : memref<2x8x32xf32, #tpu.memory_space<vmem>>, vector<2x8x32xf32>
      tpu.vector_store %arg12[%c0_57, %c0_58, %c0_59], %163 {strides = array<i32>} : memref<2x8x32xf32, #tpu.memory_space<vmem>>, vector<2x8x32xf32>,
    } else {
    }
    %c0_5 = arith.constant 0 : index
    %c0_6 = arith.constant 0 : index
    %c0_7 = arith.constant 0 : index
    %6 = vector.load %arg12[%c0_5, %c0_6, %c0_7] : memref<2x8x32xf32, #tpu.memory_space<vmem>>, vector<2x8x32xf32>
    %7 = vector.shape_cast %6 : vector<2x8x32xf32> to vector<16x32xf32>
    %8 = arith.truncf %7 : vector<16x32xf32> to vector<16x32xbf16>
    %c0_8 = arith.constant 0 : index
    %c0_9 = arith.constant 0 : index
    %c0_10 = arith.constant 0 : index
    %9 = vector.load %arg4[%c0_8, %c0_9, %c0_10] : memref<1x32x96xbf16, #tpu.memory_space<vmem>>, vector<1x32x96xbf16>
    %10 = vector.shape_cast %9 : vector<1x32x96xbf16> to vector<32x96xbf16>
    %cst = arith.constant dense<0.000000e+00> : vector<16x96xf32>
    %11 = tpu.matmul %8, %10, %cst {dimension_numbers = #tpu.dot_dimension_numbers<[1], [0], [0], [1], [0, 0, 1, 1], [], []>} : vector<16x32xbf16>, vector<32x96xbf16>, vector<16x96xf32> -> vector<16x96xf32>
    %12 = vector.extract_strided_slice %1 {offsets = [0, 0], sizes = [1, 96], strides = [1, 1]} : vector<8x128xf32> to vector<1x96xf32>
    %13 = vector.broadcast %12 : vector<1x96xf32> to vector<16x96xf32>
    %14 = arith.addf %11, %13 : vector<16x96xf32>
    %15 = vector.shape_cast %14 : vector<16x96xf32> to vector<2x8x96xf32>
    %16 = vector.extract_strided_slice %15 {offsets = [0, 0, 0], sizes = [2, 8, 8], strides = [1, 1, 1]} : vector<2x8x96xf32> to vector<2x8x8xf32>
    %17 = vector.extract_strided_slice %15 {offsets = [0, 0, 8], sizes = [2, 8, 8], strides = [1, 1, 1]} : vector<2x8x96xf32> to vector<2x8x8xf32>
    %18 = vector.extract_strided_slice %15 {offsets = [0, 0, 16], sizes = [2, 8, 8], strides = [1, 1, 1]} : vector<2x8x96xf32> to vector<2x8x8xf32>
    %19 = vector.extract_strided_slice %15 {offsets = [0, 0, 24], sizes = [2, 8, 8], strides = [1, 1, 1]} : vector<2x8x96xf32> to vector<2x8x8xf32>
    %20 = tpu.concatenate %16, %17, %18, %19 in 0 : vector<2x8x8xf32>, vector<2x8x8xf32>, vector<2x8x8xf32>, vector<2x8x8xf32> -> vector<8x8x8xf32>
    %21 = vector.extract_strided_slice %15 {offsets = [0, 0, 32], sizes = [2, 8, 8], strides = [1, 1, 1]} : vector<2x8x96xf32> to vector<2x8x8xf32>
    %22 = vector.extract_strided_slice %15 {offsets = [0, 0, 40], sizes = [2, 8, 8], strides = [1, 1, 1]} : vector<2x8x96xf32> to vector<2x8x8xf32>
    %23 = vector.extract_strided_slice %15 {offsets = [0, 0, 48], sizes = [2, 8, 8], strides = [1, 1, 1]} : vector<2x8x96xf32> to vector<2x8x8xf32>
    %24 = vector.extract_strided_slice %15 {offsets = [0, 0, 56], sizes = [2, 8, 8], strides = [1, 1, 1]} : vector<2x8x96xf32> to vector<2x8x8xf32>
    %25 = tpu.concatenate %21, %22, %23, %24 in 0 : vector<2x8x8xf32>, vector<2x8x8xf32>, vector<2x8x8xf32>, vector<2x8x8xf32> -> vector<8x8x8xf32>
    %26 = vector.extract_strided_slice %15 {offsets = [0, 0, 64], sizes = [2, 8, 8], strides = [1, 1, 1]} : vector<2x8x96xf32> to vector<2x8x8xf32>
    %27 = vector.extract_strided_slice %15 {offsets = [0, 0, 72], sizes = [2, 8, 8], strides = [1, 1, 1]} : vector<2x8x96xf32> to vector<2x8x8xf32>
    %28 = vector.extract_strided_slice %15 {offsets = [0, 0, 80], sizes = [2, 8, 8], strides = [1, 1, 1]} : vector<2x8x96xf32> to vector<2x8x8xf32>
    %29 = vector.extract_strided_slice %15 {offsets = [0, 0, 88], sizes = [2, 8, 8], strides = [1, 1, 1]} : vector<2x8x96xf32> to vector<2x8x8xf32>
    %30 = tpu.concatenate %26, %27, %28, %29 in 0 : vector<2x8x8xf32>, vector<2x8x8xf32>, vector<2x8x8xf32>, vector<2x8x8xf32> -> vector<8x8x8xf32>
    "tpu.trace_start"() <{level = 10 : i32, message = "nqd,nkd->nqk"}> : () -> ()
    %cst_11 = arith.constant dense<0.000000e+00> : vector<8x8x8xf32>
    %31 = tpu.matmul %20, %25, %cst_11 {dimension_numbers = #tpu.dot_dimension_numbers<[2], [2], [1], [1], [0, 0, 0, 1, 1, 1], [0], [0]>} : vector<8x8x8xf32>, vector<8x8x8xf32>, vector<8x8x8xf32> -> vector<8x8x8xf32>
    "tpu.trace_stop"() : () -> ()
    %cst_12 = arith.constant 0.353553385 : f32
    %32 = vector.broadcast %cst_12 : f32 to vector<8x8x8xf32>
    %33 = arith.mulf %31, %32 : vector<8x8x8xf32>
    %c0_13 = arith.constant 0 : index
    %c0_14 = arith.constant 0 : index
    %c0_15 = arith.constant 0 : index
    %34 = vector.load %arg2[%c0_13, %c0_14, %c0_15] : memref<8x1x8xf32, #tpu.memory_space<vmem>>, vector<8x1x8xf32>
    %35 = vector.broadcast %34 : vector<8x1x8xf32> to vector<8x8x8xf32>
    %36 = arith.addf %33, %35 : vector<8x8x8xf32>
    %cst_16 = arith.constant dense<0xFF800000> : vector<8x8xf32>
    %37 = vector.multi_reduction <maximumf>, %36, %cst_16 [2] : vector<8x8x8xf32> to vector<8x8xf32>
    %38 = vector.shape_cast %37 : vector<8x8xf32> to vector<8x8x1xf32>
    %39 = vector.broadcast %38 : vector<8x8x1xf32> to vector<8x8x8xf32>
    %40 = arith.subf %36, %39 : vector<8x8x8xf32>
    %41 = math.exp %40 : vector<8x8x8xf32>
    %cst_17 = arith.constant dense<0.000000e+00> : vector<8x8xf32>
    %42 = vector.multi_reduction <add>, %41, %cst_17 [2] : vector<8x8x8xf32> to vector<8x8xf32>
    %43 = vector.shape_cast %42 : vector<8x8xf32> to vector<8x8x1xf32>
    %44 = tpu.reciprocal %43 {approx = true} : vector<8x8x1xf32> -> vector<8x8x1xf32>
    %45 = vector.broadcast %44 : vector<8x8x1xf32> to vector<8x8x8xf32>
    %46 = arith.mulf %41, %45 : vector<8x8x8xf32>
    "tpu.trace_start"() <{level = 10 : i32, message = "nqk,nkd->nqd"}> : () -> ()
    %cst_18 = arith.constant dense<0.000000e+00> : vector<8x8x8xf32>
    %47 = tpu.matmul %46, %30, %cst_18 {dimension_numbers = #tpu.dot_dimension_numbers<[2], [1], [1], [2], [0, 0, 0, 1, 1, 2], [0], [0]>} : vector<8x8x8xf32>, vector<8x8x8xf32>, vector<8x8x8xf32> -> vector<8x8x8xf32>
    "tpu.trace_stop"() : () -> ()
    %48 = vector.extract_strided_slice %47 {offsets = [0, 0, 0], sizes = [2, 8, 8], strides = [1, 1, 1]} : vector<8x8x8xf32> to vector<2x8x8xf32>
    %49 = vector.extract_strided_slice %47 {offsets = [2, 0, 0], sizes = [2, 8, 8], strides = [1, 1, 1]} : vector<8x8x8xf32> to vector<2x8x8xf32>
    %50 = vector.extract_strided_slice %47 {offsets = [4, 0, 0], sizes = [2, 8, 8], strides = [1, 1, 1]} : vector<8x8x8xf32> to vector<2x8x8xf32>
    %51 = vector.extract_strided_slice %47 {offsets = [6, 0, 0], sizes = [2, 8, 8], strides = [1, 1, 1]} : vector<8x8x8xf32> to vector<2x8x8xf32>
    %52 = tpu.concatenate %48, %49, %50, %51 in 2 : vector<2x8x8xf32>, vector<2x8x8xf32>, vector<2x8x8xf32>, vector<2x8x8xf32> -> vector<2x8x32xf32>
    %53 = vector.shape_cast %52 : vector<2x8x32xf32> to vector<16x32xf32>
    %54 = arith.truncf %53 : vector<16x32xf32> to vector<16x32xbf16>
    %c0_19 = arith.constant 0 : index
    %c0_20 = arith.constant 0 : index
    %c0_21 = arith.constant 0 : index
    %55 = vector.load %arg5[%c0_19, %c0_20, %c0_21] : memref<1x32x32xbf16, #tpu.memory_space<vmem>>, vector<1x32x32xbf16>
    %56 = vector.shape_cast %55 : vector<1x32x32xbf16> to vector<32x32xbf16>
    %cst_22 = arith.constant dense<0.000000e+00> : vector<16x32xf32>
    %57 = tpu.matmul %54, %56, %cst_22 {dimension_numbers = #tpu.dot_dimension_numbers<[1], [0], [0], [1], [0, 0, 1, 1], [], []>} : vector<16x32xbf16>, vector<32x32xbf16>, vector<16x32xf32> -> vector<16x32xf32>
    %58 = vector.extract_strided_slice %1 {offsets = [1, 0], sizes = [1, 32], strides = [1, 1]} : vector<8x128xf32> to vector<1x32xf32>
    %59 = vector.broadcast %58 : vector<1x32xf32> to vector<16x32xf32>
    %60 = arith.addf %57, %59 : vector<16x32xf32>
    %61 = arith.addf %7, %60 : vector<16x32xf32>
    %62 = vector.extract_strided_slice %1 {offsets = [2, 0], sizes = [1, 32], strides = [1, 1]} : vector<8x128xf32> to vector<1x32xf32>
    %63 = vector.extract_strided_slice %1 {offsets = [3, 0], sizes = [1, 32], strides = [1, 1]} : vector<8x128xf32> to vector<1x32xf32>
    %cst_23 = arith.constant dense<0.000000e+00> : vector<16xf32>
    %64 = vector.multi_reduction <add>, %61, %cst_23 [1] : vector<16x32xf32> to vector<16xf32>
    %65 = vector.shape_cast %64 : vector<16xf32> to vector<16x1xf32>
    %cst_24 = arith.constant 3.200000e+01 : f32
    %66 = vector.broadcast %cst_24 : f32 to vector<16x1xf32>
    %67 = arith.divf %65, %66 : vector<16x1xf32>
    %68 = vector.broadcast %67 : vector<16x1xf32> to vector<16x32xf32>
    %69 = arith.subf %61, %68 : vector<16x32xf32>
    %70 = arith.mulf %69, %69 : vector<16x32xf32>
    %cst_25 = arith.constant dense<0.000000e+00> : vector<16xf32>
    %71 = vector.multi_reduction <add>, %70, %cst_25 [1] : vector<16x32xf32> to vector<16xf32>
    %72 = vector.shape_cast %71 : vector<16xf32> to vector<16x1xf32>
    %cst_26 = arith.constant 3.200000e+01 : f32
    %73 = vector.broadcast %cst_26 : f32 to vector<16x1xf32>
    %74 = arith.divf %72, %73 : vector<16x1xf32>
    %cst_27 = arith.constant 9.99999996E-13 : f32
    %75 = vector.broadcast %cst_27 : f32 to vector<16x1xf32>
    %76 = arith.addf %74, %75 : vector<16x1xf32>
    %77 = math.rsqrt %76 : vector<16x1xf32>
    %78 = vector.broadcast %77 : vector<16x1xf32> to vector<16x32xf32>
    %79 = arith.mulf %69, %78 : vector<16x32xf32>
    %80 = vector.broadcast %62 : vector<1x32xf32> to vector<16x32xf32>
    %81 = arith.mulf %79, %80 : vector<16x32xf32>
    %82 = vector.broadcast %63 : vector<1x32xf32> to vector<16x32xf32>
    %83 = arith.addf %81, %82 : vector<16x32xf32>
    %84 = arith.truncf %83 : vector<16x32xf32> to vector<16x32xbf16>
    %c0_28 = arith.constant 0 : index
    %c0_29 = arith.constant 0 : index
    %c0_30 = arith.constant 0 : index
    %85 = vector.load %arg6[%c0_28, %c0_29, %c0_30] : memref<1x32x128xbf16, #tpu.memory_space<vmem>>, vector<1x32x128xbf16>
    %86 = vector.shape_cast %85 : vector<1x32x128xbf16> to vector<32x128xbf16>
    %cst_31 = arith.constant dense<0.000000e+00> : vector<16x128xf32>
    %87 = tpu.matmul %84, %86, %cst_31 {dimension_numbers = #tpu.dot_dimension_numbers<[1], [0], [0], [1], [0, 0, 1, 1], [], []>} : vector<16x32xbf16>, vector<32x128xbf16>, vector<16x128xf32> -> vector<16x128xf32>
    %88 = vector.extract_strided_slice %1 {offsets = [4, 0], sizes = [1, 128], strides = [1, 1]} : vector<8x128xf32> to vector<1x128xf32>
    %89 = vector.broadcast %88 : vector<1x128xf32> to vector<16x128xf32>
    %90 = arith.addf %87, %89 : vector<16x128xf32>
    %cst_32 = arith.constant 5.000000e-01 : f32
    %91 = vector.broadcast %cst_32 : f32 to vector<16x128xf32>
    %92 = arith.mulf %91, %90 : vector<16x128xf32>
    %cst_33 = arith.constant 4.471500e-02 : f32
    %93 = vector.broadcast %cst_33 : f32 to vector<16x128xf32>
    %94 = arith.mulf %93, %90 : vector<16x128xf32>
    %95 = arith.mulf %94, %90 : vector<16x128xf32>
    %96 = arith.mulf %95, %90 : vector<16x128xf32>
    %97 = arith.addf %90, %96 : vector<16x128xf32>
    %cst_34 = arith.constant 0.797884583 : f32
    %98 = vector.broadcast %cst_34 : f32 to vector<16x128xf32>
    %99 = arith.mulf %98, %97 : vector<16x128xf32>
    %100 = math.tanh %99 : vector<16x128xf32>
    %cst_35 = arith.constant 1.000000e+00 : f32
    %101 = vector.broadcast %cst_35 : f32 to vector<16x128xf32>
    %102 = arith.addf %101, %100 : vector<16x128xf32>
    %103 = arith.mulf %92, %102 : vector<16x128xf32>
    %104 = arith.truncf %103 : vector<16x128xf32> to vector<16x128xbf16>
    %c0_36 = arith.constant 0 : index
    %c0_37 = arith.constant 0 : index
    %c0_38 = arith.constant 0 : index
    %105 = vector.load %arg7[%c0_36, %c0_37, %c0_38] : memref<1x128x32xbf16, #tpu.memory_space<vmem>>, vector<1x128x32xbf16>
    %106 = vector.shape_cast %105 : vector<1x128x32xbf16> to vector<128x32xbf16>
    %cst_39 = arith.constant dense<0.000000e+00> : vector<16x32xf32>
    %107 = tpu.matmul %104, %106, %cst_39 {dimension_numbers = #tpu.dot_dimension_numbers<[1], [0], [0], [1], [0, 0, 1, 1], [], []>} : vector<16x128xbf16>, vector<128x32xbf16>, vector<16x32xf32> -> vector<16x32xf32>
    %108 = vector.extract_strided_slice %1 {offsets = [5, 0], sizes = [1, 32], strides = [1, 1]} : vector<8x128xf32> to vector<1x32xf32>
    %109 = vector.broadcast %108 : vector<1x32xf32> to vector<16x32xf32>
    %110 = arith.addf %107, %109 : vector<16x32xf32>
    %111 = arith.addf %83, %110 : vector<16x32xf32>
    %112 = vector.extract_strided_slice %1 {offsets = [6, 0], sizes = [1, 32], strides = [1, 1]} : vector<8x128xf32> to vector<1x32xf32>
    %113 = vector.extract_strided_slice %1 {offsets = [7, 0], sizes = [1, 32], strides = [1, 1]} : vector<8x128xf32> to vector<1x32xf32>
    %cst_40 = arith.constant dense<0.000000e+00> : vector<16xf32>
    %114 = vector.multi_reduction <add>, %111, %cst_40 [1] : vector<16x32xf32> to vector<16xf32>
    %115 = vector.shape_cast %114 : vector<16xf32> to vector<16x1xf32>
    %cst_41 = arith.constant 3.200000e+01 : f32
    %116 = vector.broadcast %cst_41 : f32 to vector<16x1xf32>
    %117 = arith.divf %115, %116 : vector<16x1xf32>
    %118 = vector.broadcast %117 : vector<16x1xf32> to vector<16x32xf32>
    %119 = arith.subf %111, %118 : vector<16x32xf32>
    %120 = arith.mulf %119, %119 : vector<16x32xf32>
    %cst_42 = arith.constant dense<0.000000e+00> : vector<16xf32>
    %121 = vector.multi_reduction <add>, %120, %cst_42 [1] : vector<16x32xf32> to vector<16xf32>
    %122 = vector.shape_cast %121 : vector<16xf32> to vector<16x1xf32>
    %cst_43 = arith.constant 3.200000e+01 : f32
    %123 = vector.broadcast %cst_43 : f32 to vector<16x1xf32>
    %124 = arith.divf %122, %123 : vector<16x1xf32>
    %cst_44 = arith.constant 9.99999996E-13 : f32
    %125 = vector.broadcast %cst_44 : f32 to vector<16x1xf32>
    %126 = arith.addf %124, %125 : vector<16x1xf32>
    %127 = math.rsqrt %126 : vector<16x1xf32>
    %128 = vector.broadcast %127 : vector<16x1xf32> to vector<16x32xf32>
    %129 = arith.mulf %119, %128 : vector<16x32xf32>
    %130 = vector.broadcast %112 : vector<1x32xf32> to vector<16x32xf32>
    %131 = arith.mulf %129, %130 : vector<16x32xf32>
    %132 = vector.broadcast %113 : vector<1x32xf32> to vector<16x32xf32>
    %133 = arith.addf %131, %132 : vector<16x32xf32>
    %134 = vector.shape_cast %133 : vector<16x32xf32> to vector<2x8x32xf32>
    %c0_45 = arith.constant 0 : index
    %c0_46 = arith.constant 0 : index
    %c0_47 = arith.constant 0 : index
    %135 = vector.load %arg12[%c0_45, %c0_46, %c0_47] : memref<2x8x32xf32, #tpu.memory_space<vmem>>, vector<2x8x32xf32>
    tpu.vector_store %arg12[%c0_45, %c0_46, %c0_47], %134 {strides = array<i32>} : memref<2x8x32xf32, #tpu.memory_space<vmem>>, vector<2x8x32xf32>,
    %c1_i32 = arith.constant 1 : i32
    %136 = arith.cmpi eq, %arg0, %c1_i32 : i32
    %137 = arith.extui %136 : i1 to i32
    %c0_i32_48 = arith.constant 0 : i32
    %138 = arith.cmpi ne, %137, %c0_i32_48 : i32
    scf.if %138 {
      %139 = vector.extract_strided_slice %133 {offsets = [0, 0], sizes = [1, 32], strides = [1, 1]} : vector<16x32xf32> to vector<1x32xf32>
      %140 = vector.extract_strided_slice %133 {offsets = [8, 0], sizes = [1, 32], strides = [1, 1]} : vector<16x32xf32> to vector<1x32xf32>
      %141 = tpu.concatenate %139, %140 in 0 : vector<1x32xf32>, vector<1x32xf32> -> vector<2x32xf32>
      %142 = arith.truncf %141 : vector<2x32xf32> to vector<2x32xbf16>
      %c0_49 = arith.constant 0 : index
      %c0_50 = arith.constant 0 : index
      %143 = vector.load %arg9[%c0_49, %c0_50] : memref<32x32xbf16, #tpu.memory_space<vmem>>, vector<32x32xbf16>
      %cst_51 = arith.constant dense<0.000000e+00> : vector<2x32xf32>
      %144 = tpu.matmul %142, %143, %cst_51 {dimension_numbers = #tpu.dot_dimension_numbers<[1], [0], [0], [1], [0, 0, 1, 1], [], []>} : vector<2x32xbf16>, vector<32x32xbf16>, vector<2x32xf32> -> vector<2x32xf32>
      %145 = vector.extract_strided_slice %2 {offsets = [2, 0], sizes = [1, 32], strides = [1, 1]} : vector<4x128xf32> to vector<1x32xf32>
      %146 = vector.broadcast %145 : vector<1x32xf32> to vector<2x32xf32>
      %147 = arith.addf %144, %146 : vector<2x32xf32>
      %148 = math.tanh %147 : vector<2x32xf32>
      %149 = arith.truncf %148 : vector<2x32xf32> to vector<2x32xbf16>
      %c0_52 = arith.constant 0 : index
      %c0_53 = arith.constant 0 : index
      %150 = vector.load %arg10[%c0_52, %c0_53] : memref<32x128xbf16, #tpu.memory_space<vmem>>, vector<32x128xbf16>
      %cst_54 = arith.constant dense<0.000000e+00> : vector<2x128xf32>
      %151 = tpu.matmul %149, %150, %cst_54 {dimension_numbers = #tpu.dot_dimension_numbers<[1], [0], [0], [1], [0, 0, 1, 1], [], []>} : vector<2x32xbf16>, vector<32x128xbf16>, vector<2x128xf32> -> vector<2x128xf32>
      %152 = vector.extract_strided_slice %2 {offsets = [3, 0], sizes = [1, 128], strides = [1, 1]} : vector<4x128xf32> to vector<1x128xf32>
      %153 = vector.broadcast %152 : vector<1x128xf32> to vector<2x128xf32>
      %154 = arith.addf %151, %153 : vector<2x128xf32>
      %c0_55 = arith.constant 0 : index
      %c0_56 = arith.constant 0 : index
      %155 = vector.load %arg11[%c0_55, %c0_56] : memref<2x128xf32, #tpu.memory_space<vmem>>, vector<2x128xf32>
      tpu.vector_store %arg11[%c0_55, %c0_56], %154 {strides = array<i32>} : memref<2x128xf32, #tpu.memory_space<vmem>>, vector<2x128xf32>,
    } else {
    }
    return
  }
  func.func @transform_0(%arg0: i32) -> (i32, i32, i32) {
    %c0_i32 = arith.constant 0 : i32
    %c0_i32_0 = arith.constant 0 : i32
    %c0_i32_1 = arith.constant 0 : i32
    %c0_i32_2 = arith.constant 0 : i32
    return %c0_i32, %c0_i32_0, %c0_i32_1 : i32, i32, i32
  }
  func.func @transform_1(%arg0: i32) -> (i32, i32, i32) {
    %c0_i32 = arith.constant 0 : i32
    %c0_i32_0 = arith.constant 0 : i32
    %c0_i32_1 = arith.constant 0 : i32
    %c0_i32_2 = arith.constant 0 : i32
    return %c0_i32, %c0_i32_0, %c0_i32_1 : i32, i32, i32
  }
  func.func @transform_2(%arg0: i32) -> (i32, i32) {
    %c0_i32 = arith.constant 0 : i32
    %c0_i32_0 = arith.constant 0 : i32
    %c0_i32_1 = arith.constant 0 : i32
    return %c0_i32, %c0_i32_0 : i32, i32
  }
  func.func @transform_3(%arg0: i32) -> (i32, i32, i32) {
    %c0_i32 = arith.constant 0 : i32
    %c0_i32_0 = arith.constant 0 : i32
    %c0_i32_1 = arith.constant 0 : i32
    return %arg0, %c0_i32, %c0_i32_0 : i32, i32, i32
  }
  func.func @transform_4(%arg0: i32) -> (i32, i32, i32) {
    %c0_i32 = arith.constant 0 : i32
    %c0_i32_0 = arith.constant 0 : i32
    %c0_i32_1 = arith.constant 0 : i32
    return %arg0, %c0_i32, %c0_i32_0 : i32, i32, i32
  }
  func.func @transform_5(%arg0: i32) -> (i32, i32, i32) {
    %c0_i32 = arith.constant 0 : i32
    %c0_i32_0 = arith.constant 0 : i32
    %c0_i32_1 = arith.constant 0 : i32
    return %arg0, %c0_i32, %c0_i32_0 : i32, i32, i32
  }
  func.func @transform_6(%arg0: i32) -> (i32, i32, i32) {
    %c0_i32 = arith.constant 0 : i32
    %c0_i32_0 = arith.constant 0 : i32
    %c0_i32_1 = arith.constant 0 : i32
    return %arg0, %c0_i32, %c0_i32_0 : i32, i32, i32
  }
  func.func @transform_7(%arg0: i32) -> (i32, i32, i32) {
    %c0_i32 = arith.constant 0 : i32
    %c0_i32_0 = arith.constant 0 : i32
    %c0_i32_1 = arith.constant 0 : i32
    return %arg0, %c0_i32, %c0_i32_0 : i32, i32, i32
  }
  func.func @transform_8(%arg0: i32) -> (i32, i32) {
    %c0_i32 = arith.constant 0 : i32
    %c0_i32_0 = arith.constant 0 : i32
    %c0_i32_1 = arith.constant 0 : i32
    return %c0_i32, %c0_i32_0 : i32, i32
  }
  func.func @transform_9(%arg0: i32) -> (i32, i32) {
    %c0_i32 = arith.constant 0 : i32
    %c0_i32_0 = arith.constant 0 : i32
    %c0_i32_1 = arith.constant 0 : i32
    return %c0_i32, %c0_i32_0 : i32, i32
  }
  func.func @transform_10(%arg0: i32) -> (i32, i32) {
    %c0_i32 = arith.constant 0 : i32
    %c0_i32_0 = arith.constant 0 : i32
    %c0_i32_1 = arith.constant 0 : i32
    return %c0_i32, %c0_i32_0 : i32, i32
  }
}

</mosaic_0001>

<bundles_post_ra>
// kernel: model_forward.1
= control target key start
LH: loop header
LB: loop body
LE: loop exit
PB: predicated region body
PF: predicated region fallthrough
CT: control target
= control target key end

     0   :  { %15 = vsyncpa [#allocation4], 0  ;;  %s3029_s13 = smov 0   ;;  %s3400_s0 = inlined_call_operand.vmem [shape: f32[2,8,32], index: 0, kind: input, shape index: {}]   ;;  %s3401_s1 = inlined_call_operand.vmem [shape: f32[8,1,8], index: 1, kind: input, shape index: {}]   ;;  %s3402_s2 = inlined_call_operand.vmem [shape: f32[4,128], index: 2, kind: input, shape index: {}]   ;;  %s3403_s3 = inlined_call_operand.vmem [shape: bf16[2,32,96], index: 3, kind: input, shape index: {}]   ;;  %s3404_s4 = inlined_call_operand.vmem [shape: bf16[2,32,32], index: 4, kind: input, shape index: {}]   ;;  %s3405_s5 = inlined_call_operand.vmem [shape: bf16[2,32,128], index: 5, kind: input, shape index: {}]   ;;  %s3406_s6 = inlined_call_operand.vmem [shape: bf16[2,128,32], index: 6, kind: input, shape index: {}]   ;;  %s3407_s7 = inlined_call_operand.vmem [shape: f32[2,8,128], index: 7, kind: input, shape index: {}]   ;;  %s3408_s8 = inlined_call_operand.vmem [shape: bf16[32,32], index: 8, kind: input, shape index: {}]   ;;  %s3409_s9 = inlined_call_operand.vmem [shape: bf16[32,128], index: 9, kind: input, shape index: {}]   ;;  %s3410_s10 = inlined_call_operand.hbm [shape: f32[2,128], index: 10, kind: output, shape index: {}]  }
   0x1 LB: > { %s3035_s14 = sadd.s32 4294967295, %s2959_s13   ;;  %p2542_p0 = scmp.ge.s32.totalorder %s2959_s13, 1  ;;  %s2959_s13 = sphi %s3029_s13, %s21_s13  }
   0x2   : > { %p347_p1 = scmp.lt.s32.totalorder %s2959_s13, 3 }
   0x4   : > { %p348_p2 = pnand %p2542_p0, %p347_p1 }
   0x5   : > { %p399_p3 = scmp.lt.s32.totalorder (!%p348_p2), %s3035_s14, 1  ;;  %v3043_v0 = vld [vmem:[%s3402_s2] sm:$0xf] (!%p348_p2)  ;;  %p2552_p4 = scmp.ne.s32.totalorder (!%p348_p2), %s3035_s14, 0 }
   0x6   : > { %351 = sbr.rel (%p348_p2) target bundleno = 3446 (0xd76), region = 60 }
   0xd   : > { %s400_s17 = scalar_select %p399_p3, %s3035_s14, 1 }
   0xe   : > { %429 = sbr.rel (%p2552_p4) target bundleno = 333 (0x14d), region = 64  ;;  %v430_v2 = vld [vmem:[%s3400_s0] sm:$0xff] (!%p2552_p4)  ;;  %vm432_vm0 = vcmask (!%p2552_p4), 261120   ;;  %v431_v3 = vld [vmem:[%s3400_s0 + $0x8] sm:$0xff] (!%p2552_p4)  ;;  %v460_v18 = vlaneseq (!%p2552_p4) }
   0xf   : > { %s2613_s18 = sshll.u32 %s400_s17, 4  ;;  %s2616_s19 = sshll.u32 %s400_s17, 6  ;;  %v433_v4 = vsel (!%p2552_p4), %vm432_vm0, %v430_v2, 0.0  ;;  %v436_v5 = vsel (!%p2552_p4), %vm432_vm0, %v431_v3, 0.0 }
  0x10   : > { %s3049_s22 = scalar_lea.vmem %s3403_s3, %s2613_s18  ;;  %s3054_s25 = scalar_lea.vmem %s3404_s4, %s2613_s18  ;;  %434 = vadd.xlane.f32.xlu0 (!%p2552_p4), %v433_v4  ;;  %v461_v22 = vshrl.u32 (!%p2552_p4), %v460_v18, 7 }
  0x11   : > { %s3059_s28 = scalar_lea.vmem %s3405_s5, %s2613_s18  ;;  %s3064_s11 = scalar_lea.vmem %s3406_s6, %s2616_s19 }
  0x12   : > { %s2551_s12 = sshll.u32 %s400_s17, 3  ;;  %v462_v24 = vsub.s32 (!%p2552_p4), 0, %v461_v22  ;;  %v468_v25 = vsub.s32 (!%p2552_p4), 1, %v461_v22 }
  0x13   : > { %s422_s20 = scalar_lea.vmem %s3407_s7, %s2551_s12 }
  0x14   : > { %v3069_v1 = vld [vmem:[%s422_s20] sm:$0xff]  ;;  %437 = vadd.xlane.f32.xlu0 (!%p2552_p4), %v436_v5  ;;  %v463_v26 = vrot.slane (!%p2552_p4), %v3043_v0, %v462_v24  ;;  %v469_v28 = vrot.slane (!%p2552_p4), %v3043_v0, %v468_v25 }
  0x9d   : > { %v435_v6 = vpop.xlane.xlu0 %434 }
  0x9e   : > { %v440_v7 = vmul.f32 0.03125, %v435_v6 }
  0xa0   : > { %v442_v8 = vsub.f32 %v430_v2, %v440_v7 }
  0xa1   : > { %v438_v9 = vpop.xlane.xlu0 %437 }
  0xa2   : > { %v441_v10 = vmul.f32 0.03125, %v438_v9  ;;  %v444_v11 = vmul.f32 %v442_v8, %v442_v8 }
  0xa4   : > { %v443_v12 = vsub.f32 %v431_v3, %v441_v10  ;;  %v446_v13 = vsel %vm432_vm0, %v444_v11, 0.0 }
  0xa5   : > { %447 = vadd.xlane.f32.xlu1 %v446_v13 }
  0xa6   : > { %v445_v14 = vmul.f32 %v443_v12, %v443_v12 }
  0xa8   : > { %v449_v15 = vsel %vm432_vm0, %v445_v14, 0.0 }
  0xa9   : > { %450 = vadd.xlane.f32.xlu1 %v449_v15 }
 0x132   : > { %v448_v16 = vpop.xlane.xlu1 %447 }
 0x133   : > { %v452_v17 = vmul.f32 0.03125, %v448_v16 }
 0x135   : > { %v454_v19 = vadd.f32 1e-12, %v452_v17 }
 0x136   : > { %v451_v20 = vpop.xlane.xlu1 %450 }
 0x137   : > { %2840 = vrsqrt.f32 %v454_v19  ;;  %v453_v21 = vmul.f32 0.03125, %v451_v20 }
 0x139   : > { %v455_v23 = vadd.f32 1e-12, %v453_v21 }
 0x13b   : > { %2842 = vrsqrt.f32 %v455_v23 }
 0x141   : > { %v2841_v27 = vpop.eup %2840 }
 0x142   : > { %v458_v29 = vmul.f32 %v2841_v27, %v442_v8 }
 0x144   : > { %v464_v30 = vmul.f32 %v463_v26, %v458_v29 }
 0x145   : > { %v2843_v31 = vpop.eup %2842 }
 0x146   : > { %v470_v32 = vadd.f32 %v469_v28, %v464_v30  ;;  %v459_v33 = vmul.f32 %v2843_v31, %v443_v12 }
 0x148   : > { %472 = vst.msk [vmem:[#allocation2] sm:$0xff] %vm432_vm0, %v470_v32  ;;  %v465_v34 = vmul.f32 %v463_v26, %v459_v33 }
 0x14a   : > { %v471_v35 = vadd.f32 %v469_v28, %v465_v34 }
 0x14c   : > { %473 = vst.msk [vmem:[#allocation2 + $0x8] sm:$0xff] %vm432_vm0, %v471_v35 }
 0x14d PF: > { %v2859_v36 = vld [vmem:[%s3049_s22] sm:$0xff]   ;;  %v2961_v37 = vmov 0.0   ;;  %v2860_v38 = vld [vmem:[%s3049_s22 + $0x8] sm:$0xff]   ;;  %vm2962_vm1 = vmmov 0   ;;  %vm497_vm2 = vcmask 261120   ;;  %v481_v42 = vlaneseq  ;;  %s2963_s17 = smov 112  }
 0x14e   : > { %2673 = vmatprep.subr.bf16.mxu0 %v2961_v37  ;;  %2686 = vmatprep.subr.mxu1 %v2961_v37  ;;  %s2964_s19 = smov 120   ;;  %s2965_s22 = smov 104   ;;  %vm558_vm3 = vcmask 64512   ;;  %v2573_v5 = vld [vmem:[%s3401_s1 + $0x1] ss:$0 sm:$0xff]  ;;  %vm1959_vm4 = vcmask 130048  }
 0x14f   : > { %2674 = vmatpush3.bf16.msra.mxu0 %v2859_v36  ;;  %2677 = vmatprep.mubr.msk.bf16.mxu0 %vm2962_vm1, %v2961_v37  ;;  %v3092_v39 = vld [vmem:[#allocation2] sm:$0xff]  ;;  %v3105_v43 = vshrl.u32 %v481_v42, 7  ;;  %s2966_s26 = smov 96   ;;  %s2967_s29 = smov 64   ;;  %vm1962_vm5 = vcmask 195584  }
 0x150   : > { %2675 = vmatprep.subr.bf16.mxu0 %v2961_v37  ;;  %2688 = vmatprep.mubr.msk.f32.mxu1 %vm2962_vm1, %v2961_v37  ;;  %v2572_v9 = vld [vmem:[%s3401_s1] ss:$0 sm:$0xff]  ;;  %v2574_v17 = vld [vmem:[%s3401_s1 + $0x2] ss:$0 sm:$0xff]  ;;  %v2576_v23 = vld [vmem:[%s3401_s1 + $0x4] ss:$0 sm:$0xff] }
 0x151   : > { %v483_v44 = vsub.s32 0, %v3105_v43  ;;  %v2575_v24 = vld [vmem:[%s3401_s1 + $0x3] ss:$0 sm:$0xff]  ;;  %v2578_v34 = vld [vmem:[%s3401_s1 + $0x6] ss:$0 sm:$0xff]  ;;  %s2968_s30 = smov 8  }
 0x152   : > { %v2577_v35 = vld [vmem:[%s3401_s1 + $0x5] ss:$0 sm:$0xff]  ;;  %s2969_s12 = smov 16   ;;  %p2602_p5 = scmp.ne.s32.totalorder %s3035_s14, 1 }
 0x153   : > { %v3094_v40 = vld [vmem:[#allocation2 + $0x8] sm:$0xff]  ;;  %2676 = vmatpush3.bf16.msra.mxu0 %v2860_v38  ;;  %v484_v45 = vrot.slane %v3069_v1, %v483_v44  ;;  %vm2972_vm6 = vmmov (!%p2602_p5), 0   ;;  %vm2313_vm7 = vcmask (!%p2602_p5), 1040384  }
 0x154   : > { %v476_v41 = vpack.c.bf16 %v3094_v40, %v3092_v39  ;;  %2681 = vmatprep.subr.mxu0 %v2961_v37 }
 0x156   : > { %2678 = vmatmul.mubr.msk.bf16.vlgmr.msra.gmra.mrb[0].mxu0 %vm497_vm2, %v476_v41 }
 0x157   : > { %2683 = vmatprep.mubr.msk.f32.mxu0 %vm2962_vm1, %v2961_v37 }
 0x229   : > { %v535_v46 = vpop.f32.mrb[0].mxu0 }
 0x22a   : > { %v3109_v47 = vadd.f32 %v535_v46, %v484_v45  ;;  %v2679_v48 = vpop.f32.mrb[1].mxu0 }
 0x22b   : > { %v538_v49 = vpop.f32.mrb[2].mxu0 }
 0x22c   : > { %548 = vrot.lane.b32.xlu1 %v3109_v47, %s2963_s17  ;;  %544 = vrot.lane.b32.xlu0 %v3109_v47, %s2964_s19  ;;  %v2680_v50 = vpop.f32.mrb[3].mxu0  ;;  %v3113_v51 = vadd.f32 %v538_v49, %v484_v45 }
 0x22d   : > { %v2579_v50 = vld [vmem:[%s3401_s1 + $0x7] ss:$0 sm:$0xff] }
 0x230   : > { %550 = vrot.lane.b32.xlu1 %v3113_v51, %s2963_s17  ;;  %546 = vrot.lane.b32.xlu0 %v3113_v51, %s2964_s19 }
 0x234   : > { %554 = vrot.lane.b32.xlu1 %v3113_v51, %s2965_s22  ;;  %552 = vrot.lane.b32.xlu0 %v3109_v47, %s2965_s22 }
 0x238   : > { %633 = vrot.lane.b32.xlu1 %v3113_v51, %s2966_s26  ;;  %556 = vrot.lane.b32.xlu0 %v3109_v47, %s2966_s26 }
 0x29e   : > { %v3121_v52 = vpop.permute.xlu1 %548  ;;  %v3123_v53 = vpop.permute.xlu0 %544 }
 0x29f   : > { %709 = vrot.lane.b32.xlu0 %v3123_v53, %s2966_s26 }
 0x2a2   : > { %v3126_v54 = vpop.permute.xlu1 %550  ;;  %v3128_v55 = vpop.permute.xlu0 %546 }
 0x2a3   : > { %861 = vrot.lane.b32.xlu0 %v3121_v52, %s2966_s26  ;;  %785 = vrot.lane.b32.xlu1 %v3128_v55, %s2966_s26 }
 0x2a6   : > { %v3132_v56 = vpop.permute.xlu1 %554  ;;  %v3134_v57 = vpop.permute.xlu0 %552 }
 0x2a7   : > { %937 = vrot.lane.b32.xlu1 %v3126_v54, %s2966_s26  ;;  %1013 = vrot.lane.b32.xlu0 %v3134_v57, %s2966_s26 }
 0x2aa   : > { %v634_v58 = vpop.permute.xlu1 %633  ;;  %v557_v59 = vpop.permute.xlu0 %556 }
 0x2ab   : > { %2687 = vmatpush3.xpose.msk.msra.mxu1 %vm558_vm3, %v634_v58  ;;  %1089 = vrot.lane.b32.xlu1 %v3132_v56, %s2966_s26 }
 0x2ac   : > { %2682 = vmatpush3.xpose.msk.msra.mxu0 %vm558_vm3, %v557_v59  ;;  %2691 = vmatprep.subr.mxu1 %v2961_v37 }
 0x2ad   : > { %2696 = vmatprep.subr.mxu0 %v2961_v37 }
 0x2ae   : > { %2689 = vmatmul.mubr.msk.f32.vlgmr.msra.gmra.mrb[0].mxu1 %vm558_vm3, %v3113_v51 }
 0x2af   : > { %2684 = vmatmul.mubr.msk.f32.vlgmr.msra.gmra.mrb[4].mxu0 %vm558_vm3, %v3109_v47  ;;  %2693 = vmatprep.mubr.msk.f32.mxu1 %vm2962_vm1, %v2961_v37 }
 0x2b0   : > { %2698 = vmatprep.mubr.msk.f32.mxu0 %vm2962_vm1, %v2961_v37 }
 0x311   : > { %v710_v60 = vpop.permute.xlu0 %709 }
 0x312   : > { %2692 = vmatpush3.xpose.msk.msra.mxu1 %vm558_vm3, %v710_v60 }
 0x313   : > { %2701 = vmatprep.subr.mxu1 %v2961_v37 }
 0x315   : > { %v786_v61 = vpop.permute.xlu1 %785  ;;  %2694 = vmatmul.mubr.msk.f32.vlgmr.msra.gmra.mrb[2].mxu1 %vm558_vm3, %v3123_v53  ;;  %v862_v62 = vpop.permute.xlu0 %861 }
 0x316   : > { %2697 = vmatpush3.xpose.msk.msra.mxu0 %vm558_vm3, %v786_v61  ;;  %2702 = vmatpush3.xpose.msk.msra.mxu1 %vm558_vm3, %v862_v62 }
 0x317   : > { %2703 = vmatprep.mubr.msk.f32.mxu1 %vm2962_vm1, %v2961_v37  ;;  %2706 = vmatprep.subr.mxu0 %v2961_v37 }
 0x318   : > { %2711 = vmatprep.subr.mxu1 %v2961_v37 }
 0x319   : > { %v938_v63 = vpop.permute.xlu1 %937  ;;  %2699 = vmatmul.mubr.msk.f32.vlgmr.msra.gmra.mrb[6].mxu0 %vm558_vm3, %v3128_v55  ;;  %2704 = vmatmul.mubr.msk.f32.vlgmr.msra.gmra.mrb[4].mxu1 %vm558_vm3, %v3121_v52  ;;  %v1014_v2 = vpop.permute.xlu0 %1013 }
 0x31a   : > { %2707 = vmatpush3.xpose.msk.msra.mxu0 %vm558_vm3, %v938_v63  ;;  %2712 = vmatpush3.xpose.msk.msra.mxu1 %vm558_vm3, %v1014_v2 }
 0x31b   : > { %2708 = vmatprep.mubr.msk.f32.mxu0 %vm2962_vm1, %v2961_v37  ;;  %2713 = vmatprep.mubr.msk.f32.mxu1 %vm2962_vm1, %v2961_v37 }
 0x31c   : > { %2716 = vmatprep.subr.mxu0 %v2961_v37  ;;  %2721 = vmatprep.subr.mxu1 %v2961_v37 }
 0x31d   : > { %v1090_v3 = vpop.permute.xlu1 %1089  ;;  %2709 = vmatmul.mubr.msk.f32.vlgmr.msra.gmra.mrb[8].mxu0 %vm558_vm3, %v3126_v54  ;;  %2714 = vmatmul.mubr.msk.f32.vlgmr.msra.gmra.mrb[6].mxu1 %vm558_vm3, %v3134_v57 }
 0x31e   : > { %2717 = vmatpush3.xpose.msk.msra.mxu0 %vm558_vm3, %v1090_v3  ;;  %2718 = vmatprep.mubr.msk.f32.mxu0 %vm2962_vm1, %v2961_v37 }
 0x31f   : > { %2726 = vmatprep.subr.mxu0 %v2961_v37  ;;  %2723 = vmatprep.mubr.msk.f32.mxu1 %vm2962_vm1, %v2961_v37 }
 0x321   : > { %2719 = vmatmul.mubr.msk.f32.vlgmr.msra.gmra.mrb[10].mxu0 %vm558_vm3, %v3132_v56 }
 0x322   : > { %2728 = vmatprep.mubr.msk.f32.mxu0 %vm2962_vm1, %v2961_v37 }
 0x381   : > { %v705_v4 = vpop.f32.mrb[0].mxu1 }
 0x382   : > { %v629_v6 = vpop.f32.mrb[4].mxu0  ;;  %v1166_v7 = vmul.f32 0.35355338, %v705_v4  ;;  %v2690_v8 = vpop.f32.mrb[1].mxu1 }
 0x383   : > { %v1165_v10 = vmul.f32 0.35355338, %v629_v6  ;;  %v2685_v11 = vpop.f32.mrb[5].mxu0 }
 0x384   : > { %v1230_v12 = vadd.f32 %v2573_v5, %v1166_v7 }
 0x385   : > { %v1229_v13 = vadd.f32 %v2572_v9, %v1165_v10 }
 0x386   : > { %v1240_v14 = vsel %vm558_vm3, %v1230_v12, -inf }
 0x387   : > { %1241 = vmax.xlane.f32.xlu1 %v1240_v14  ;;  %v1237_v15 = vsel %vm558_vm3, %v1229_v13, -inf }
 0x388   : > { %1238 = vmax.xlane.f32.xlu0 %v1237_v15 }
 0x3e8   : > { %v781_v16 = vpop.f32.mrb[2].mxu1 }
 0x3e9   : > { %v1167_v18 = vmul.f32 0.35355338, %v781_v16  ;;  %v2695_v19 = vpop.f32.mrb[3].mxu1 }
 0x3eb   : > { %v1231_v20 = vadd.f32 %v2574_v17, %v1167_v18 }
 0x3ec   : > { %v857_v21 = vpop.f32.mrb[6].mxu0  ;;  %v933_v22 = vpop.f32.mrb[4].mxu1 }
 0x3ed   : > { %v1168_v25 = vmul.f32 0.35355338, %v857_v21  ;;  %v1169_v26 = vmul.f32 0.35355338, %v933_v22  ;;  %v2700_v27 = vpop.f32.mrb[7].mxu0  ;;  %v2705_v28 = vpop.f32.mrb[5].mxu1 }
 0x3ee   : > { %v1243_v29 = vsel %vm558_vm3, %v1231_v20, -inf }
 0x3ef   : > { %1244 = vmax.xlane.f32.xlu0 %v1243_v29  ;;  %v1233_v30 = vadd.f32 %v2576_v23, %v1169_v26  ;;  %v1232_v31 = vadd.f32 %v2575_v24, %v1168_v25 }
 0x3f0   : > { %v1009_v32 = vpop.f32.mrb[8].mxu0  ;;  %v1085_v33 = vpop.f32.mrb[6].mxu1 }
 0x3f1   : > { %v1170_v36 = vmul.f32 0.35355338, %v1009_v32  ;;  %v1171_v38 = vmul.f32 0.35355338, %v1085_v33  ;;  %v2710_v41 = vpop.f32.mrb[9].mxu0  ;;  %v2715_v42 = vpop.f32.mrb[7].mxu1 }
 0x3f2   : > { %v1249_v44 = vsel %vm558_vm3, %v1233_v30, -inf  ;;  %v1246_v45 = vsel %vm558_vm3, %v1232_v31, -inf }
 0x3f3   : > { %1250 = vmax.xlane.f32.xlu1 %v1249_v44  ;;  %1247 = vmax.xlane.f32.xlu0 %v1246_v45  ;;  %v1235_v46 = vadd.f32 %v2578_v34, %v1171_v38  ;;  %v1234_v48 = vadd.f32 %v2577_v35, %v1170_v36 }
 0x3f4   : > { %v1161_v49 = vpop.f32.mrb[10].mxu0 }
 0x3f5   : > { %v1172_v58 = vmul.f32 0.35355338, %v1161_v49  ;;  %v2720_v59 = vpop.f32.mrb[11].mxu0  ;;  %v1255_v60 = vsel %vm558_vm3, %v1235_v46, -inf  ;;  %v1252_v61 = vsel %vm558_vm3, %v1234_v48, -inf }
 0x3f7   : > { %1256 = vmax.xlane.f32.xlu1 %v1255_v60  ;;  %1253 = vmax.xlane.f32.xlu0 %v1252_v61  ;;  %v1236_v62 = vadd.f32 %v2579_v50, %v1172_v58 }
 0x3f9   : > { %v1258_v63 = vsel %vm558_vm3, %v1236_v62, -inf }
 0x3fb   : > { %1259 = vmax.xlane.f32.xlu0 %v1258_v63 }
 0x408   : > { %1325 = vrot.lane.b32.xlu1 %v3109_v47, %s2967_s29 }
 0x40c   : > { %1477 = vrot.lane.b32.xlu1 %v3123_v53, %s2967_s29 }
 0x410   : > { %1553 = vrot.lane.b32.xlu1 %v3128_v55, %s2967_s29 }
 0x411   : > { %1401 = vrot.lane.b32.xlu0 %v3113_v51, %s2967_s29 }
 0x414   : > { %1705 = vrot.lane.b32.xlu1 %v3126_v54, %s2967_s29  ;;  %v1242_v2 = vpop.xlane.xlu1 %1241 }
 0x415   : > { %1629 = vrot.lane.b32.xlu0 %v3121_v52, %s2967_s29  ;;  %v1262_v3 = vsub.f32 %v1230_v12, %v1242_v2  ;;  %v1239_v4 = vpop.xlane.xlu0 %1238 }
 0x416   : > { %v1261_v47 = vsub.f32 %v1229_v13, %v1239_v4 }
 0x417   : > { %v1271_v5 = vmul.f32 1.442695, %v1262_v3 }
 0x418   : > { %v1269_v6 = vmul.f32 1.442695, %v1261_v47 }
 0x419   : > { %2873 = vpow2.f32 %v1271_v5 }
 0x41a   : > { %2875 = vpow2.f32 %v1269_v6 }
 0x423   : > { %v3231_v53 = vpop.eup %2873 }
 0x424   : > { %v1288_v55 = vsel %vm558_vm3, %v3231_v53, 0.0  ;;  %v3235_v51 = vpop.eup %2875 }
 0x425   : > { %v1285_v54 = vsel %vm558_vm3, %v3235_v51, 0.0 }
 0x434   : > { %1289 = vadd.xlane.f32.xlu0 %v1288_v55 }
 0x438   : > { %1286 = vadd.xlane.f32.xlu1 %v1285_v54 }
 0x47c   : > { %v1245_v52 = vpop.xlane.xlu0 %1244 }
 0x47d   : > { %v1263_v7 = vsub.f32 %v1231_v20, %v1245_v52 }
 0x47f   : > { %v1273_v8 = vmul.f32 1.442695, %v1263_v7 }
 0x480   : > { %v1251_v9 = vpop.xlane.xlu1 %1250  ;;  %v1248_v10 = vpop.xlane.xlu0 %1247 }
 0x481   : > { %2877 = vpow2.f32 %v1273_v8  ;;  %v1265_v11 = vsub.f32 %v1233_v30, %v1251_v9  ;;  %v1264_v12 = vsub.f32 %v1232_v31, %v1248_v10 }
 0x483   : > { %v1277_v13 = vmul.f32 1.442695, %v1265_v11  ;;  %v1275_v14 = vmul.f32 1.442695, %v1264_v12 }
 0x484   : > { %v1257_v15 = vpop.xlane.xlu1 %1256  ;;  %v1254_v16 = vpop.xlane.xlu0 %1253 }
 0x485   : > { %2879 = vpow2.f32 %v1277_v13  ;;  %v1267_v17 = vsub.f32 %v1235_v46, %v1257_v15  ;;  %v1266_v18 = vsub.f32 %v1234_v48, %v1254_v16  ;;  %v2861_v15 = vld [vmem:[%s3054_s25] sm:$0xff]  }
 0x486   : > { %2881 = vpow2.f32 %v1275_v14 }
 0x487   : > { %v1281_v19 = vmul.f32 1.442695, %v1267_v17  ;;  %v1279_v21 = vmul.f32 1.442695, %v1266_v18  ;;  %v2862_v18 = vld [vmem:[%s3054_s25 + $0x8] sm:$0xff]   ;;  %s2970_s25 = smov 24  }
 0x488   : > { %v1326_v22 = vpop.permute.xlu1 %1325  ;;  %v1260_v23 = vpop.xlane.xlu0 %1259 }
 0x489   : > { %2883 = vpow2.f32 %v1281_v19  ;;  %v1268_v20 = vsub.f32 %v1236_v62, %v1260_v23  ;;  %2722 = vmatpush3.msra.mxu1 %v1326_v22 }
 0x48a   : > { %2885 = vpow2.f32 %v1279_v21  ;;  %2731 = vmatprep.subr.mxu1 %v2961_v37 }
 0x48b   : > { %v2878_v24 = vpop.eup %2877  ;;  %v1283_v25 = vmul.f32 1.442695, %v1268_v20 }
 0x48c   : > { %v1402_v26 = vpop.permute.xlu0 %1401  ;;  %v1291_v27 = vsel %vm558_vm3, %v2878_v24, 0.0  ;;  %v1478_v41 = vpop.permute.xlu1 %1477 }
 0x48d   : > { %2887 = vpow2.f32 %v1283_v25  ;;  %1292 = vadd.xlane.f32.xlu1 %v1291_v27  ;;  %2727 = vmatpush3.msra.mxu0 %v1402_v26 }
 0x48e   : > { %2736 = vmatprep.subr.mxu0 %v2961_v37 }
 0x48f   : > { %v2880_v28 = vpop.eup %2879 }
 0x490   : > { %v2882_v29 = vpop.eup %2881  ;;  %v1297_v30 = vsel %vm558_vm3, %v2880_v28, 0.0  ;;  %v1554_v42 = vpop.permute.xlu1 %1553 }
 0x491   : > { %1298 = vadd.xlane.f32.xlu1 %v1297_v30  ;;  %v1294_v31 = vsel %vm558_vm3, %v2882_v29, 0.0  ;;  %v1630_v44 = vpop.permute.xlu0 %1629 }
 0x492   : > { %1295 = vadd.xlane.f32.xlu0 %v1294_v31 }
 0x493   : > { %v2884_v32 = vpop.eup %2883 }
 0x494   : > { %v2886_v33 = vpop.eup %2885  ;;  %v1303_v34 = vsel %vm558_vm3, %v2884_v32, 0.0  ;;  %v1706_v45 = vpop.permute.xlu1 %1705 }
 0x495   : > { %1304 = vadd.xlane.f32.xlu1 %v1303_v34  ;;  %v1300_v35 = vsel %vm558_vm3, %v2886_v33, 0.0 }
 0x496   : > { %1301 = vadd.xlane.f32.xlu0 %v1300_v35 }
 0x497   : > { %v3246_v36 = vpop.eup %2887 }
 0x498   : > { %v1306_v38 = vsel %vm558_vm3, %v3246_v36, 0.0 }
 0x49a   : > { %1307 = vadd.xlane.f32.xlu0 %v1306_v38 }
 0x4a6   : > { %1857 = vrot.lane.b32.xlu1 %v3132_v56, %s2967_s29 }
 0x4b0   : > { %1781 = vrot.lane.b32.xlu0 %v3134_v57, %s2967_s29 }
 0x4c1   : > { %v1290_v46 = vpop.xlane.xlu0 %1289 }
 0x4c2   : > { %2889 = vrcp.f32 %v1290_v46 }
 0x4c5   : > { %v1287_v48 = vpop.xlane.xlu1 %1286 }
 0x4c6   : > { %2891 = vrcp.f32 %v1287_v48 }
 0x4cc   : > { %v2890_v49 = vpop.eup %2889 }
 0x4cd   : > { %v1318_v50 = vmul.f32 %v2890_v49, %v3231_v53 }
 0x4cf   : > { %2729 = vmatmul.mubr.msk.f32.vlgmr.msra.gmra.mrb[12].mxu0 %vm558_vm3, %v1318_v50 }
 0x4d0   : > { %v2892_v58 = vpop.eup %2891  ;;  %2737 = vmatpush3.msra.mxu0 %v1554_v42  ;;  %2738 = vmatprep.mubr.msk.f32.mxu0 %vm2962_vm1, %v2961_v37 }
 0x4d1   : > { %v1317_v56 = vmul.f32 %v2892_v58, %v3235_v51  ;;  %2746 = vmatprep.subr.mxu0 %v2961_v37 }
 0x4d3   : > { %2724 = vmatmul.mubr.msk.f32.vlgmr.msra.gmra.mrb[8].mxu1 %vm558_vm3, %v1317_v56  ;;  %v1972_v56 = vsub.s32 1, %v3105_v43 }
 0x4d4   : > { %2732 = vmatpush3.msra.mxu1 %v1478_v41  ;;  %2733 = vmatprep.mubr.msk.f32.mxu1 %vm2962_vm1, %v2961_v37 }
 0x4d5   : > { %2741 = vmatprep.subr.mxu1 %v2961_v37 }
 0x51a   : > { %v1293_v57 = vpop.xlane.xlu1 %1292 }
 0x51b   : > { %2893 = vrcp.f32 %v1293_v57  ;;  %v1973_v57 = vrot.slane %v3069_v1, %v1972_v56 }
 0x51e   : > { %v1299_v59 = vpop.xlane.xlu1 %1298 }
 0x51f   : > { %2895 = vrcp.f32 %v1299_v59  ;;  %v1296_v60 = vpop.xlane.xlu0 %1295 }
 0x520   : > { %2897 = vrcp.f32 %v1296_v60 }
 0x522   : > { %v1305_v61 = vpop.xlane.xlu1 %1304 }
 0x523   : > { %2899 = vrcp.f32 %v1305_v61  ;;  %v1302_v62 = vpop.xlane.xlu0 %1301 }
 0x524   : > { %2901 = vrcp.f32 %v1302_v62 }
 0x525   : > { %v2894_v63 = vpop.eup %2893 }
 0x526   : > { %v1319_v2 = vmul.f32 %v2894_v63, %v2878_v24  ;;  %v1858_v7 = vpop.permute.xlu1 %1857 }
 0x527   : > { %v1308_v3 = vpop.xlane.xlu0 %1307 }
 0x528   : > { %2903 = vrcp.f32 %v1308_v3  ;;  %2734 = vmatmul.mubr.msk.f32.vlgmr.msra.gmra.mrb[10].mxu1 %vm558_vm3, %v1319_v2 }
 0x529   : > { %v2896_v4 = vpop.eup %2895  ;;  %2742 = vmatpush3.msra.mxu1 %v1630_v44  ;;  %2743 = vmatprep.mubr.msk.f32.mxu1 %vm2962_vm1, %v2961_v37 }
 0x52a   : > { %v2898_v5 = vpop.eup %2897  ;;  %v1321_v47 = vmul.f32 %v2896_v4, %v2880_v28  ;;  %2751 = vmatprep.subr.mxu1 %v2961_v37 }
 0x52b   : > { %v1320_v6 = vmul.f32 %v2898_v5, %v2882_v29  ;;  %v1782_v53 = vpop.permute.xlu0 %1781 }
 0x52c   : > { %2744 = vmatmul.mubr.msk.f32.vlgmr.msra.gmra.mrb[12].mxu1 %vm558_vm3, %v1321_v47 }
 0x52d   : > { %v2900_v55 = vpop.eup %2899  ;;  %2739 = vmatmul.mubr.msk.f32.vlgmr.msra.gmra.mrb[14].mxu0 %vm558_vm3, %v1320_v6  ;;  %2752 = vmatpush3.msra.mxu1 %v1782_v53 }
 0x52e   : > { %v2902_v51 = vpop.eup %2901  ;;  %v1323_v54 = vmul.f32 %v2900_v55, %v2884_v32  ;;  %2747 = vmatpush3.msra.mxu0 %v1706_v45  ;;  %2748 = vmatprep.mubr.msk.f32.mxu0 %vm2962_vm1, %v2961_v37 }
 0x52f   : > { %v1322_v52 = vmul.f32 %v2902_v51, %v2886_v33  ;;  %2753 = vmatprep.mubr.msk.f32.mxu1 %vm2962_vm1, %v2961_v37  ;;  %2756 = vmatprep.subr.mxu0 %v2961_v37 }
 0x530   : > { %2754 = vmatmul.mubr.msk.f32.vlgmr.msra.gmra.mrb[14].mxu1 %vm558_vm3, %v1323_v54  ;;  %2777 = vmatprep.subr.bf16.mxu1 %v2961_v37 }
 0x531   : > { %2749 = vmatmul.mubr.msk.f32.vlgmr.msra.gmra.mrb[16].mxu0 %vm558_vm3, %v1322_v52  ;;  %2793 = vmatprep.mubr.msk.bf16.mxu1 %vm2962_vm1, %v2961_v37 }
 0x532   : > { %v2904_v8 = vpop.eup %2903  ;;  %2757 = vmatpush3.msra.mxu0 %v1858_v7  ;;  %2758 = vmatprep.mubr.msk.f32.mxu0 %vm2962_vm1, %v2961_v37 }
 0x533   : > { %v1324_v9 = vmul.f32 %v2904_v8, %v3246_v36  ;;  %2761 = vmatprep.subr.bf16.mxu0 %v2961_v37 }
 0x535   : > { %2759 = vmatmul.mubr.msk.f32.vlgmr.msra.gmra.mrb[18].mxu0 %vm558_vm3, %v1324_v9 }
 0x536   : > { %2765 = vmatprep.mubr.msk.bf16.mxu0 %vm2962_vm1, %v2961_v37  ;;  %2762 = vmatpush3.bf16.msra.mxu0 %v2861_v15 }
 0x537   : > { %2763 = vmatprep.subr.bf16.mxu0 %v2961_v37 }
 0x53a   : > { %2764 = vmatpush3.bf16.msra.mxu0 %v2862_v18 }
 0x53b   : > { %2769 = vmatprep.subr.bf16.mxu0 %v2961_v37 }
 0x5a2   : > { %v1473_v10 = vpop.f32.mrb[12].mxu0 }
 0x5a3   : > { %v2730_v11 = vpop.f32.mrb[13].mxu0 }
 0x5a6   : > { %v1397_v12 = vpop.f32.mrb[8].mxu1 }
 0x5a7   : > { %v2725_v13 = vpop.f32.mrb[9].mxu1 }
 0x5fb   : > { %v1549_v14 = vpop.f32.mrb[10].mxu1 }
 0x5fc   : > { %v2735_v16 = vpop.f32.mrb[11].mxu1 }
 0x5ff   : > { %v1701_v17 = vpop.f32.mrb[12].mxu1 }
 0x600   : > { %v1625_v19 = vpop.f32.mrb[14].mxu0  ;;  %v2745_v21 = vpop.f32.mrb[13].mxu1 }
 0x601   : > { %v2844_v22 = vpack.i.bf16 %v1625_v19, %v1549_v14  ;;  %v2740_v23 = vpop.f32.mrb[15].mxu0  ;;  %v2067_v19 = vsub.s32 3, %v3105_v43 }
 0x603   : > { %2845 = vrot.lane.b32.xlu0 %v2844_v22, %s2968_s30  ;;  %v1853_v20 = vpop.f32.mrb[14].mxu1 }
 0x604   : > { %v1777_v24 = vpop.f32.mrb[16].mxu0  ;;  %v2755_v25 = vpop.f32.mrb[15].mxu1 }
 0x605   : > { %v2849_v26 = vpack.i.bf16 %v1777_v24, %v1701_v17  ;;  %v2750_v27 = vpop.f32.mrb[17].mxu0  ;;  %v2061_v17 = vsub.s32 2, %v3105_v43  ;;  %v2068_v25 = vrot.slane %v3069_v1, %v2067_v19 }
 0x607   : > { %2850 = vrot.lane.b32.xlu1 %v2849_v26, %s2969_s12  ;;  %v2062_v18 = vrot.slane %v3069_v1, %v2061_v17 }
 0x608   : > { %v1929_v28 = vpop.f32.mrb[18].mxu0 }
 0x609   : > { %v2854_v29 = vpack.i.bf16 %v1929_v28, %v1853_v20  ;;  %v2760_v30 = vpop.f32.mrb[19].mxu0 }
 0x60a   : > { %v2865_v30 = vld [vmem:[%s3064_s11] sm:$0xff]  }
 0x60b   : > { %2855 = vrot.lane.b32.xlu0 %v2854_v29, %s2970_s25  ;;  %2778 = vmatpush3.bf16.msra.mxu1 %v2865_v30 }
 0x60c   : > { %2779 = vmatprep.subr.bf16.mxu1 %v2961_v37 }
 0x675   : > { %v2846_v31 = vpop.permute.xlu0 %2845 }
 0x676   : > { %v2848_v33 = vunpack.i.h.bf16 %v2846_v31  ;;  %v2847_v34 = vunpack.i.l.bf16 %v2846_v31  ;;  %v2866_v31 = vld [vmem:[%s3064_s11 + $0x8] sm:$0xff]  }
 0x677   : > { %2780 = vmatpush3.bf16.msra.mxu1 %v2866_v31 }
 0x678   : > { %v1958_v41 = vsel %vm558_vm3, %v1473_v10, %v2848_v33  ;;  %v1957_v42 = vsel %vm558_vm3, %v1397_v12, %v2847_v34  ;;  %v2864_v10 = vld [vmem:[%s3059_s28 + $0x8] sm:$0xff]   ;;  %2781 = vmatprep.subr.bf16.mxu1 %v2961_v37  ;;  %v2868_v33 = vld [vmem:[%s3064_s11 + $0x18] sm:$0xff]   ;;  %v2869_v34 = vld [vmem:[%s3064_s11 + $0x20] sm:$0xff]  }
 0x679   : > { %v2851_v32 = vpop.permute.xlu1 %2850 }
 0x67a   : > { %v2853_v35 = vunpack.i.h.bf16 %v2851_v32  ;;  %v2852_v36 = vunpack.i.l.bf16 %v2851_v32  ;;  %v2867_v32 = vld [vmem:[%s3064_s11 + $0x10] sm:$0xff]  }
 0x67b   : > { %2782 = vmatpush3.bf16.msra.mxu1 %v2867_v32 }
 0x67c   : > { %v1961_v46 = vsel %vm1959_vm4, %v1958_v41, %v2853_v35  ;;  %v1960_v48 = vsel %vm1959_vm4, %v1957_v42, %v2852_v36  ;;  %2783 = vmatprep.subr.bf16.mxu1 %v2961_v37  ;;  %v2870_v35 = vld [vmem:[%s3064_s11 + $0x28] sm:$0xff]   ;;  %v2871_v36 = vld [vmem:[%s3064_s11 + $0x30] sm:$0xff]   ;;  %v2078_v41 = vsub.s32 4, %v3105_v43 }
 0x67d   : > { %v2856_v38 = vpop.permute.xlu0 %2855 }
 0x67e   : > { %v2858_v44 = vunpack.i.h.bf16 %v2856_v38  ;;  %v2857_v45 = vunpack.i.l.bf16 %v2856_v38  ;;  %v2872_v38 = vld [vmem:[%s3064_s11 + $0x38] sm:$0xff]   ;;  %v2079_v42 = vrot.slane %v3069_v1, %v2078_v41 }
 0x67f   : > { %2784 = vmatpush3.bf16.msra.mxu1 %v2868_v33 }
 0x680   : > { %v1964_v49 = vsel %vm1962_vm5, %v1961_v46, %v2858_v44  ;;  %v1963_v50 = vsel %vm1962_vm5, %v1960_v48, %v2857_v45  ;;  %2785 = vmatprep.subr.bf16.mxu1 %v2961_v37 }
 0x681   : > { %v1965_v58 = vpack.c.bf16 %v1964_v49, %v1963_v50 }
 0x683   : > { %2766 = vmatmul.mubr.msk.bf16.vlgmr.msra.gmra.mrb[20].mxu0 %vm497_vm2, %v1965_v58  ;;  %2786 = vmatpush3.bf16.msra.mxu1 %v2869_v34  ;;  %v2294_v34 = vsub.s32 6, %v3105_v43 }
 0x684   : > { %2773 = vmatprep.mubr.msk.bf16.mxu0 %vm2962_vm1, %v2961_v37  ;;  %2787 = vmatprep.subr.bf16.mxu1 %v2961_v37 }
 0x687   : > { %2788 = vmatpush3.bf16.msra.mxu1 %v2870_v35  ;;  %v2300_v35 = vsub.s32 7, %v3105_v43 }
 0x688   : > { %2789 = vmatprep.subr.bf16.mxu1 %v2961_v37 }
 0x689   : > { %v2301_v41 = vrot.slane %v3069_v1, %v2300_v35 }
 0x68b   : > { %2790 = vmatpush3.bf16.msra.mxu1 %v2871_v36  ;;  %v2295_v36 = vrot.slane %v3069_v1, %v2294_v34 }
 0x68c   : > { %2791 = vmatprep.subr.bf16.mxu1 %v2961_v37 }
 0x68f   : > { %2792 = vmatpush3.bf16.msra.mxu1 %v2872_v38 }
 0x756   : > { %v2023_v59 = vpop.f32.mrb[20].mxu0 }
 0x757   : > { %v2024_v60 = vadd.f32 %v2023_v59, %v1973_v57  ;;  %v2767_v61 = vpop.f32.mrb[21].mxu0 }
 0x758   : > { %v2026_v62 = vpop.f32.mrb[22].mxu0 }
 0x759   : > { %v2027_v63 = vadd.f32 %v2026_v62, %v1973_v57  ;;  %v2768_v2 = vpop.f32.mrb[23].mxu0  ;;  %v2030_v3 = vadd.f32 %v2024_v60, %v3092_v39 }
 0x75b   : > { %v2032_v4 = vsel %vm497_vm2, %v2030_v3, 0.0  ;;  %v2031_v5 = vadd.f32 %v2027_v63, %v3094_v40  ;;  %v2863_v40 = vld [vmem:[%s3059_s28] sm:$0xff]  }
 0x75c   : > { %2033 = vadd.xlane.f32.xlu1 %v2032_v4  ;;  %2770 = vmatpush3.bf16.msra.mxu0 %v2863_v40 }
 0x75d   : > { %v2035_v47 = vsel %vm497_vm2, %v2031_v5, 0.0  ;;  %2771 = vmatprep.subr.bf16.mxu0 %v2961_v37 }
 0x75e   : > { %2036 = vadd.xlane.f32.xlu0 %v2035_v47 }
 0x760   : > { %2772 = vmatpush3.bf16.msra.mxu0 %v2864_v10 }
 0x7e9   : > { %v2034_v6 = vpop.xlane.xlu1 %2033 }
 0x7ea   : > { %v2039_v53 = vmul.f32 0.03125, %v2034_v6 }
 0x7eb   : > { %v2037_v55 = vpop.xlane.xlu0 %2036 }
 0x7ec   : > { %v2041_v51 = vsub.f32 %v2030_v3, %v2039_v53  ;;  %v2040_v54 = vmul.f32 0.03125, %v2037_v55 }
 0x7ee   : > { %v2042_v52 = vsub.f32 %v2031_v5, %v2040_v54  ;;  %v2043_v7 = vmul.f32 %v2041_v51, %v2041_v51 }
 0x7f0   : > { %v2045_v8 = vsel %vm497_vm2, %v2043_v7, 0.0  ;;  %v2044_v39 = vmul.f32 %v2042_v52, %v2042_v52 }
 0x7f1   : > { %2046 = vadd.xlane.f32.xlu0 %v2045_v8 }
 0x7f2   : > { %v2048_v9 = vsel %vm497_vm2, %v2044_v39, 0.0 }
 0x7f3   : > { %2049 = vadd.xlane.f32.xlu1 %v2048_v9 }
 0x87e   : > { %v2047_v11 = vpop.xlane.xlu0 %2046 }
 0x87f   : > { %v2051_v12 = vmul.f32 0.03125, %v2047_v11 }
 0x880   : > { %v2050_v13 = vpop.xlane.xlu1 %2049 }
 0x881   : > { %v2053_v14 = vadd.f32 1e-12, %v2051_v12  ;;  %v2052_v15 = vmul.f32 0.03125, %v2050_v13 }
 0x883   : > { %2905 = vrsqrt.f32 %v2053_v14  ;;  %v2054_v16 = vadd.f32 1e-12, %v2052_v15 }
 0x885   : > { %2907 = vrsqrt.f32 %v2054_v16 }
 0x88d   : > { %v2906_v21 = vpop.eup %2905 }
 0x88e   : > { %v2057_v22 = vmul.f32 %v2906_v21, %v2041_v51 }
 0x88f   : > { %v2908_v23 = vpop.eup %2907 }
 0x890   : > { %v2063_v20 = vmul.f32 %v2062_v18, %v2057_v22  ;;  %v2058_v24 = vmul.f32 %v2908_v23, %v2042_v52  ;;  %v2173_v52 = vsub.s32 5, %v3105_v43 }
 0x892   : > { %v2064_v26 = vmul.f32 %v2062_v18, %v2058_v24  ;;  %v3315_v27 = vadd.f32 %v2068_v25, %v2063_v20  ;;  %v2174_v7 = vrot.slane %v3069_v1, %v2173_v52  ;;  %v2918_v1 = vld [vmem:[%s3408_s8 + $0x8] sm:$0xff] (!%p2602_p5)  }
 0x894   : > { %v3317_v28 = vadd.f32 %v2068_v25, %v2064_v26 }
 0x896   : > { %v2071_v29 = vpack.c.bf16 %v3317_v28, %v3315_v27 }
 0x898   : > { %2774 = vmatmul.mubr.msk.bf16.vlgmr.msra.gmra.mrb[24].mxu0 %vm497_vm2, %v2071_v29 }
 0x96b   : > { %v2129_v44 = vpop.f32.mrb[24].mxu0 }
 0x96c   : > { %v2130_v45 = vadd.f32 %v2129_v44, %v2079_v42  ;;  %v2775_v46 = vpop.f32.mrb[25].mxu0 }
 0x96d   : > { %v2132_v48 = vpop.f32.mrb[26].mxu0 }
 0x96e   : > { %v2138_v49 = vmul.f32 0.044715, %v2130_v45  ;;  %v2133_v50 = vadd.f32 %v2132_v48, %v2079_v42  ;;  %v2776_v58 = vpop.f32.mrb[27].mxu0  ;;  %v2136_v47 = vmul.f32 0.5, %v2130_v45 }
 0x96f   : > { %v2917_v58 = vld [vmem:[%s3408_s8] sm:$0xff] (!%p2602_p5)  }
 0x970   : > { %v2140_v56 = vmul.f32 %v2138_v49, %v2130_v45  ;;  %v2139_v57 = vmul.f32 0.044715, %v2133_v50  ;;  %v2137_v6 = vmul.f32 0.5, %v2133_v50 }
 0x972   : > { %v2142_v59 = vmul.f32 %v2140_v56, %v2130_v45  ;;  %v2141_v60 = vmul.f32 %v2139_v57, %v2133_v50  ;;  %v2971_v56 = vmov (!%p2602_p5), 0.0  }
 0x973   : > { %2797 = vmatprep.subr.bf16.mxu0 (!%p2602_p5), %v2971_v56  ;;  %2805 = vmatprep.subr.bf16.mxu1 (!%p2602_p5), %v2971_v56 }
 0x974   : > { %v2144_v61 = vadd.f32 %v2142_v59, %v2130_v45  ;;  %v2143_v62 = vmul.f32 %v2141_v60, %v2133_v50  ;;  %2798 = vmatpush3.bf16.msra.mxu0 (!%p2602_p5), %v2917_v58  ;;  %2801 = vmatprep.mubr.msk.bf16.mxu0 (!%p2602_p5), %vm2972_vm6, %v2971_v56 }
 0x975   : > { %2799 = vmatprep.subr.bf16.mxu0 (!%p2602_p5), %v2971_v56 }
 0x976   : > { %v2146_v63 = vmul.f32 0.7978846, %v2144_v61  ;;  %v2145_v37 = vadd.f32 %v2143_v62, %v2133_v50  ;;  %v2919_v61 = vld [vmem:[%s3409_s9] sm:$0xff] (!%p2602_p5)   ;;  %v2920_v62 = vld [vmem:[%s3409_s9 + $0x8] sm:$0xff] (!%p2602_p5)  }
 0x978   : > { %2909 = vtanh.f32 %v2146_v63  ;;  %v2147_v2 = vmul.f32 0.7978846, %v2145_v37  ;;  %2800 = vmatpush3.bf16.msra.mxu0 (!%p2602_p5), %v2918_v1  ;;  %v2323_v63 = vrot.slane (!%p2602_p5), %v3043_v0, %v2061_v17 }
 0x97a   : > { %2911 = vtanh.f32 %v2147_v2 }
 0x982   : > { %v2910_v3 = vpop.eup %2909 }
 0x983   : > { %v2150_v4 = vadd.f32 1.0, %v2910_v3 }
 0x984   : > { %v2912_v5 = vpop.eup %2911 }
 0x985   : > { %v2151_v53 = vadd.f32 1.0, %v2912_v5  ;;  %v2152_v55 = vmul.f32 %v2150_v4, %v2136_v47 }
 0x987   : > { %v2153_v51 = vmul.f32 %v2151_v53, %v2137_v6  ;;  %v2388_v53 = vrot.slane (!%p2602_p5), %v3043_v0, %v2067_v19 }
 0x989   : > { %v2154_v54 = vpack.c.bf16 %v2153_v51, %v2152_v55 }
 0x98b   : > { %2794 = vmatmul.mubr.bf16.vlgmr.msra.gmra.mrb[16].mxu1 %v2154_v54 }
 0x98c   : > { %2809 = vmatprep.mubr.msk.bf16.mxu1 (!%p2602_p5), %vm2972_vm6, %v2971_v56  ;;  %2806 = vmatpush3.bf16.msra.mxu1 (!%p2602_p5), %v2919_v61 }
 0x98d   : > { %2807 = vmatprep.subr.bf16.mxu1 (!%p2602_p5), %v2971_v56 }
 0x990   : > { %2808 = vmatpush3.bf16.msra.mxu1 (!%p2602_p5), %v2920_v62 }
 0xa5e   : > { %v2257_v8 = vpop.f32.mrb[16].mxu1 }
 0xa5f   : > { %v2258_v39 = vadd.f32 %v2257_v8, %v2174_v7  ;;  %v2795_v9 = vpop.f32.mrb[17].mxu1 }
 0xa60   : > { %v2260_v40 = vpop.f32.mrb[18].mxu1 }
 0xa61   : > { %v2261_v10 = vadd.f32 %v2260_v40, %v2174_v7  ;;  %v2796_v11 = vpop.f32.mrb[19].mxu1  ;;  %v2264_v12 = vadd.f32 %v2258_v39, %v3315_v27 }
 0xa63   : > { %v2266_v13 = vsel %vm497_vm2, %v2264_v12, 0.0  ;;  %v2265_v14 = vadd.f32 %v2261_v10, %v3317_v28 }
 0xa64   : > { %2267 = vadd.xlane.f32.xlu0 %v2266_v13 }
 0xa65   : > { %v2269_v15 = vsel %vm497_vm2, %v2265_v14, 0.0 }
 0xa66   : > { %2270 = vadd.xlane.f32.xlu1 %v2269_v15 }
 0xaf1   : > { %v2268_v16 = vpop.xlane.xlu0 %2267 }
 0xaf2   : > { %v2272_v18 = vmul.f32 0.03125, %v2268_v16 }
 0xaf3   : > { %v2271_v21 = vpop.xlane.xlu1 %2270 }
 0xaf4   : > { %v2274_v22 = vsub.f32 %v2264_v12, %v2272_v18  ;;  %v2273_v23 = vmul.f32 0.03125, %v2271_v21 }
 0xaf6   : > { %v2275_v20 = vsub.f32 %v2265_v14, %v2273_v23  ;;  %v2276_v24 = vmul.f32 %v2274_v22, %v2274_v22 }
 0xaf8   : > { %v2278_v25 = vsel %vm497_vm2, %v2276_v24, 0.0  ;;  %v2277_v26 = vmul.f32 %v2275_v20, %v2275_v20 }
 0xaf9   : > { %2279 = vadd.xlane.f32.xlu0 %v2278_v25 }
 0xafa   : > { %v2281_v27 = vsel %vm497_vm2, %v2277_v26, 0.0 }
 0xafb   : > { %2282 = vadd.xlane.f32.xlu1 %v2281_v27 }
 0xb86   : > { %v2280_v29 = vpop.xlane.xlu0 %2279 }
 0xb87   : > { %v2284_v28 = vmul.f32 0.03125, %v2280_v29 }
 0xb88   : > { %v2283_v30 = vpop.xlane.xlu1 %2282 }
 0xb89   : > { %v2286_v31 = vadd.f32 1e-12, %v2284_v28  ;;  %v2285_v32 = vmul.f32 0.03125, %v2283_v30 }
 0xb8b   : > { %2913 = vrsqrt.f32 %v2286_v31  ;;  %v2287_v33 = vadd.f32 1e-12, %v2285_v32 }
 0xb8d   : > { %2915 = vrsqrt.f32 %v2287_v33 }
 0xb95   : > { %v2914_v38 = vpop.eup %2913 }
 0xb96   : > { %v2290_v42 = vmul.f32 %v2914_v38, %v2274_v22 }
 0xb97   : > { %v2916_v44 = vpop.eup %2915 }
 0xb98   : > { %v2296_v45 = vmul.f32 %v2295_v36, %v2290_v42  ;;  %v2291_v46 = vmul.f32 %v2916_v44, %v2275_v20  ;;  %2309 = sbr.rel (%p2602_p5) target bundleno = 3421 (0xd5d), region = 68 }
 0xb9a   : > { %v2302_v48 = vadd.f32 %v2301_v41, %v2296_v45  ;;  %v2297_v49 = vmul.f32 %v2295_v36, %v2291_v46 }
 0xb9c   : > { %2304 = vst.msk [vmem:[#allocation2] sm:$0xff] %vm497_vm2, %v2302_v48  ;;  %v2303_v50 = vadd.f32 %v2301_v41, %v2297_v49 }
 0xb9e   : > { %2305 = vst.msk [vmem:[#allocation2 + $0x8] sm:$0xff] %vm497_vm2, %v2303_v50  ;;  %v2311_v57 = vrot.slane (!%p2602_p5), %v2303_v50, 7 }
 0xba0   : > { %v2314_v59 = vsel %vm2313_vm7, %v2302_v48, %v2311_v57 }
 0xba1   : > { %v2315_v60 = vpack.c.bf16 %v2314_v59, %v2314_v59 }
 0xba3   : > { %2802 = vmatmul.mubr.msk.bf16.vlgmr.msra.gmra.mrb[0].mxu0 %vm497_vm2, %v2315_v60 }
 0xc76   : > { %v2373_v37 = vpop.f32.mrb[0].mxu0 }
 0xc77   : > { %v2374_v2 = vadd.f32 %v2373_v37, %v2323_v63  ;;  %v2803_v3 = vpop.f32.mrb[1].mxu0 }
 0xc78   : > { %v2376_v4 = vpop.f32.mrb[2].mxu0 }
 0xc79   : > { %2921 = vtanh.f32 %v2374_v2  ;;  %v2804_v5 = vpop.f32.mrb[3].mxu0 }
 0xc83   : > { %v2922_v47 = vpop.eup %2921 }
 0xc84   : > { %v2380_v6 = vpack.c.bf16 %v2922_v47, %v2922_v47 }
 0xc86   : > { %2810 = vmatmul.mubr.msk.bf16.vlgmr.msra.gmra.mrb[0].mxu1 %vm497_vm2, %v2380_v6 }
 0xd59   : > { %v2438_v55 = vpop.f32.mrb[0].mxu1 }
 0xd5a   : > { %v2439_v51 = vadd.f32 %v2438_v55, %v2388_v53  ;;  %v2811_v54 = vpop.f32.mrb[1].mxu1 }
 0xd5b   : > { %v2441_v52 = vpop.f32.mrb[2].mxu1 }
 0xd5c   : > { %2444 = vst [vmem:[#allocation3] sm:$0x3] %v2439_v51  ;;  %v2812_v17 = vpop.f32.mrb[3].mxu1 }
 0xd5d PF: > { %p2817_p6 = scmp.eq.s32.totalorder %s3035_s14, 1  ;;  %s2973_s24 = smov [#allocation3]  }
 0xd5e   : > { %s2452_s17 = sshll.u32 %s2973_s24, 4  ;;  %s2453_s17 = int_to_ptr.vmem [resolvable:$true] %s2452_s17 }
 0xd5f   : > { %s2923_s19 = scalar_lea.vmem %s2453_s17, 32  ;;  %p2930_p10 = scmp.lt.s32.totalorder %s2453_s17, %s2453_s17 }
 0xd60   : > { %p2924_p7 = scmp.ne.s32.totalorder %s2453_s17, %s2923_s19  ;;  %p2931_p11 = scmp.lt.s32.totalorder %s2923_s19, %s2923_s19 }
 0xd62   : > { %p2925_p8 = pnand %p2924_p7, %p2817_p6  ;;  %p2932_p12 = por %p2931_p11, %p2930_p10 }
 0xd64   : > { %p2926_p9 = pneg %p2925_p8 }
 0xd66   : > { %p2933_p13 = pnand %p2932_p12, %p2926_p9 }
 0xd68   : > { %2936 = shalt.err (!%p2933_p13)
}
 0xd69   : > { %s2937_s27 = scalar_lea.hbm %s3410_s10, 32 }
 0xd6a   : > { %p2938_p0 = scmp.ne.s32.totalorder %s3410_s10, %s2937_s27  ;;  %p2943_p3 = scmp.lt.u32.totalorder %s2937_s27, %s3410_s10 }
 0xd6c   : > { %p2939_p1 = pnand %p2938_p0, %p2817_p6 }
 0xd6e   : > { %p2940_p2 = pneg %p2939_p1 }
 0xd70   : > { %p2945_p4 = pnand %p2943_p3, %p2940_p2 }
 0xd72   : > { %2948 = shalt.err (!%p2945_p4)
}
 0xd73   : > { %2814 = dma.vmem_to_hbm [thread:$0]  (%p2817_p6), %s2453_s17, 32, %s3410_s10, [#allocation4]  }
 0xd74   : > { %2954 = dma.done.wait (%p2817_p6), [#allocation4], 32  }
 0xd75   : > { %2956 = vsyncadd (%p2817_p6), [#allocation4], 4294967264 }
 0xd76 PF: > { %s21_s13 = sadd.s32 1, %s2959_s13  }
 0xd77   : > { %p18_p5 = scmp.ge.s32.totalorder %s21_s13, 4  }
 0xd79   :  { %20 = sbr.rel (!%p18_p5) target bundleno = 1 (0x1), region = 107 }
 0xd80   :  { %2465 = vsyncpa [#allocation4], 1 }
 0xd81   :  { %2467 = vsyncpa [#allocation4 + $0x1], 1 }

</bundles_post_ra>
